<compile_context>
chip_gen: v5e
topology: v5e:2x2
jax: 0.10.0
libtpu: 0.0.40
codegen_flags: <defaults>
</compile_context>

<pallas_src>
import functools
import numpy as np

import jax
import jax.numpy as jnp
from jax.experimental import pallas as pl
from jax.experimental.pallas import tpu as pltpu

# ---- architecture constants (mirror the nn.Module __init__) -----------------
N_DEPTH = 3
N_LEAF = 2 ** (N_DEPTH + 1)   # 16; compute_mu requires n_leaf == 2**(n_depth+1)
N_LABEL = 10
N_TREE = 2
CONV_K = 5
CONV1_OUT = 10
CONV2_OUT = 20
IN_H = IN_W = 28
N_HIDDEN = 50
HIDDEN_PAD = 128              # 2 trees * 50 hidden units, zero-padded to 128 lanes


# -----------------------------------------------------------------------------
# Kernel 1: fused conv + bias + ReLU + 2x2 maxpool (no im2col).
# -----------------------------------------------------------------------------
def _conv_relu_pool_kernel(xe_ref, xo_ref, w_ref, b_ref, o_ref, *, kh, ph):
    """One image per grid step.

    xe_ref/xo_ref : (1, ceil(H/2), W*Cin) even / odd input rows, f32
    w_ref         : (2*kh, W*Cin, PW*Cout) pooled-Toeplitz weights, bf16
                    (index dj*kh + ki: dj = pooled-column parity, ki = kernel row)
    b_ref         : (1, PW*Cout) bias tiled across pooled columns, f32
    o_ref         : (1, PH, PW*Cout) pooled output, f32 (lane-dense layout)
    """
    bias = b_ref[...]
    pooled = None
    for di in range(2):                      # pooling row parity
        accs = [None, None]
        for ki in range(kh):                 # conv kernel row
            s = di + ki
            src = xe_ref if s % 2 == 0 else xo_ref
            lhs = src[0, s // 2:s // 2 + ph, :].astype(jnp.bfloat16)  # (PH, W*Cin)
            for dj in range(2):              # pooling column parity
                part = jnp.dot(lhs, w_ref[dj * kh + ki],
                               preferred_element_type=jnp.float32)
                accs[dj] = part if accs[dj] is None else accs[dj] + part
        for dj in range(2):
            y = jnp.maximum(accs[dj] + bias, 0.0)                     # bias + ReLU
            pooled = y if pooled is None else jnp.maximum(pooled, y)  # 2x2 max
    o_ref[0] = pooled


def conv_relu_pool(x3, tz, b_t):
    """x3: (N, H, W*Cin) f32.  tz: (2*kh, W*Cin, PW*Cout) bf16.  b_t: (1, PW*Cout)."""
    n, in_h, wc = x3.shape
    kh = tz.shape[0] // 2
    pwc = tz.shape[2]
    oh = in_h - kh + 1
    assert oh % 2 == 0 and wc == tz.shape[1]
    ph = oh // 2
    xe = x3[:, 0::2, :]        # tiny XLA glue: even / odd row split of the input
    xo = x3[:, 1::2, :]
    he, ho = xe.shape[1], xo.shape[1]
    kernel = functools.partial(_conv_relu_pool_kernel, kh=kh, ph=ph)
    return pl.pallas_call(
        kernel,
        out_shape=jax.ShapeDtypeStruct((n, ph, pwc), jnp.float32),
        grid=(n,),
        in_specs=[
            pl.BlockSpec((1, he, wc), lambda i: (i, 0, 0)),
            pl.BlockSpec((1, ho, wc), lambda i: (i, 0, 0)),
            pl.BlockSpec((2 * kh, wc, pwc), lambda i: (0, 0, 0)),  # weights (shared)
            pl.BlockSpec((1, pwc), lambda i: (0, 0)),              # bias (shared)
        ],
        out_specs=pl.BlockSpec((1, ph, pwc), lambda i: (i, 0, 0)),
        compiler_params=pltpu.CompilerParams(
            dimension_semantics=("parallel",)),
    )(xe, xo, tz, b_t)


# -----------------------------------------------------------------------------
# Kernel 2: forest head, both trees fused into one step.
#   h      = relu(feat @ W1_stacked + b1)                 (N, 128)
#   d      = sigmoid(h @ W2_blockdiag + b2)               (N, 32) = [tree0|tree1]
#   r      = d @ A + c   (single lane-dense 32x128 selection matmul)
#   mu     = prod over the 4 depth slabs of r             (N, 32)
#   out    = log(mu @ leafp_scaled)                       (N, 10)
# -----------------------------------------------------------------------------
def _forest_kernel(feat_ref, w1_ref, b1_ref, w2_ref, b2_ref,
                   a_ref, c_ref, lp_ref, o_ref, *, tl, n_factor):
    feat = feat_ref[...].astype(jnp.bfloat16)                            # (bm, 320)
    h = jnp.maximum(
        jnp.dot(feat, w1_ref[...], preferred_element_type=jnp.float32)
        + b1_ref[...], 0.0)                                              # (bm, 128)
    logits = jnp.dot(h.astype(jnp.bfloat16), w2_ref[...],
                     preferred_element_type=jnp.float32) + b2_ref[...]   # (bm, 32)
    d = 1.0 / (1.0 + jnp.exp(-logits))        # sigmoid (exp on EUP; tiny f32 divide)
    # all (n_depth+1) routing gathers of BOTH trees in one 128-lane matmul
    r = jnp.dot(d, a_ref[...], preferred_element_type=jnp.float32) + c_ref[...]
    mu = r[:, 0:tl]
    for k in range(1, n_factor):
        mu = mu * r[:, k * tl:(k + 1) * tl]                              # (bm, 32)
    # leaf_p is precomputed + prescaled by 1/(n_leaf*n_tree); sum over both trees'
    # leaves happens inside this single matmul.
    py = jnp.dot(mu, lp_ref[...], preferred_element_type=jnp.float32)    # (bm, 10)
    o_ref[...] = jnp.log(py)


def forest_head(feat, fp):
    n, f = feat.shape
    bm = min(n, 128)
    tl = fp["a"].shape[0]                 # n_tree * n_leaf = 32
    n_factor = fp["a"].shape[1] // tl     # n_depth + 1 = 4
    nl = fp["leafp"].shape[1]
    hpad = fp["w1"].shape[1]
    kernel = functools.partial(_forest_kernel, tl=tl, n_factor=n_factor)
    return pl.pallas_call(
        kernel,
        out_shape=jax.ShapeDtypeStruct((n, nl), jnp.float32),
        grid=(pl.cdiv(n, bm),),
        in_specs=[
            pl.BlockSpec((bm, f), lambda i: (i, 0)),
            pl.BlockSpec((f, hpad), lambda i: (0, 0)),
            pl.BlockSpec((1, hpad), lambda i: (0, 0)),
            pl.BlockSpec((hpad, tl), lambda i: (0, 0)),
            pl.BlockSpec((1, tl), lambda i: (0, 0)),
            pl.BlockSpec((tl, tl * n_factor), lambda i: (0, 0)),
            pl.BlockSpec((1, tl * n_factor), lambda i: (0, 0)),
            pl.BlockSpec((tl, nl), lambda i: (0, 0)),
        ],
        out_specs=pl.BlockSpec((bm, nl), lambda i: (i, 0)),
        compiler_params=pltpu.CompilerParams(
            dimension_semantics=("parallel",)),
    )(feat, fp["w1"], fp["b1"], fp["w2"], fp["b2"],
      fp["a"], fp["c"], fp["leafp"])


# -----------------------------------------------------------------------------
# Parameter-only preprocessing (done once, outside the per-batch forward).
# -----------------------------------------------------------------------------
def build_conv_toeplitz(w_hwio, bias, in_w):
    """Fold HWIO conv weights into pooled-Toeplitz form:
       tz[dj*kh + ki, (2*pj + dj + kj)*cin + ci, pj*cout + co] = w[ki, kj, ci, co]
    plus bias tiled to (1, pw*cout)."""
    w = np.asarray(w_hwio, np.float32)
    kh, kw, cin, cout = w.shape
    ow = in_w - kw + 1
    assert ow % 2 == 0
    pw = ow // 2
    wc = in_w * cin
    pwc = pw * cout
    tz = np.zeros((2, kh, wc, pwc), np.float32)
    for dj in range(2):
        for ki in range(kh):
            for pj in range(pw):
                for kj in range(kw):
                    col = 2 * pj + dj + kj
                    tz[dj, ki, col * cin:(col + 1) * cin,
                       pj * cout:(pj + 1) * cout] = w[ki, kj]
    b_t = np.tile(np.asarray(bias, np.float32), pw).reshape(1, pwc)
    return (jnp.asarray(tz.reshape(2 * kh, wc, pwc), jnp.bfloat16),
            jnp.asarray(b_t))


def build_routing(n_depth, n_leaf, n_tree):
    """Selection matrices reproducing compute_mu's gathers:
       node(l, k) = 2**k - 1 + l // 2**(n_depth - k + 1)
       left(l, k) = (l // 2**(n_depth - k)) even
    Each depth slab gives factor_k = d @ A_k + c_k = d[node] (left) or 1 - d[node],
    block-diagonal over trees, slabs concatenated to a lane-dense (32, 128)."""
    leaves = np.arange(n_leaf)
    eye_t = np.eye(n_tree, dtype=np.float32)
    a_slabs, c_slabs = [], []
    for k in range(n_depth + 1):
        node = (2 ** k - 1) + leaves // (2 ** (n_depth - k + 1))
        left = (leaves // (2 ** (n_depth - k))) % 2 == 0
        a = np.zeros((n_leaf, n_leaf), np.float32)
        a[node, leaves] = np.where(left, 1.0, -1.0)
        c = np.where(left, 0.0, 1.0).astype(np.float32)
        a_slabs.append(np.kron(eye_t, a))
        c_slabs.append(np.tile(c, n_tree))
    a_comb = np.concatenate(a_slabs, axis=1)            # (T*L, (D+1)*T*L) = (32,128)
    c_comb = np.concatenate(c_slabs, axis=0)[None, :]   # (1, 128)
    return jnp.asarray(a_comb), jnp.asarray(c_comb)


def prepare_forest_params(p):
    t, f, hdim = p["w1"].shape
    l = p["pi"].shape[1]
    w1 = np.asarray(p["w1"], np.float32)
    b1 = np.asarray(p["b1"], np.float32)
    w2 = np.asarray(p["w2"], np.float32)
    b2 = np.asarray(p["b2"], np.float32)
    w1s = np.zeros((f, HIDDEN_PAD), np.float32)
    b1s = np.zeros((1, HIDDEN_PAD), np.float32)
    w2bd = np.zeros((HIDDEN_PAD, t * l), np.float32)
    b2s = np.zeros((1, t * l), np.float32)
    for i in range(t):
        w1s[:, i * hdim:(i + 1) * hdim] = w1[i]
        b1s[0, i * hdim:(i + 1) * hdim] = b1[i, 0]
        w2bd[i * hdim:(i + 1) * hdim, i * l:(i + 1) * l] = w2[i]
        b2s[0, i * l:(i + 1) * l] = b2[i, 0]
    # leaf softmax + 1/(n_leaf*n_tree) scaling hoisted out of the kernel entirely
    leafp = jax.nn.softmax(p["pi"], axis=-1).reshape(t * l, -1) / (l * t)
    a_comb, c_comb = build_routing(N_DEPTH, l, t)
    return {
        "w1": jnp.asarray(w1s, jnp.bfloat16),
        "b1": jnp.asarray(b1s),
        "w2": jnp.asarray(w2bd, jnp.bfloat16),
        "b2": jnp.asarray(b2s),
        "a": a_comb,
        "c": c_comb,
        "leafp": jnp.asarray(leafp, jnp.float32),
    }


def prepare_params(p):
    pw1 = (IN_W - CONV_K + 1) // 2
    tz1, bt1 = build_conv_toeplitz(p["conv1_w"], p["conv1_b"], IN_W)
    tz2, bt2 = build_conv_toeplitz(p["conv2_w"], p["conv2_b"], pw1)
    prep = {"tz1": tz1, "bt1": bt1, "tz2": tz2, "bt2": bt2}
    prep.update(prepare_forest_params(p))
    return prep


# -----------------------------------------------------------------------------
# Parameter init (deterministic, synthetic) and full forward
# -----------------------------------------------------------------------------
def init_params(key):
    ks = jax.random.split(key, 9)
    return {
        "conv1_w": jax.random.normal(ks[0], (CONV_K, CONV_K, 1, CONV1_OUT)) * 0.1,
        "conv1_b": jax.random.normal(ks[1], (CONV1_OUT,)) * 0.1,
        "conv2_w": jax.random.normal(ks[2], (CONV_K, CONV_K, CONV1_OUT, CONV2_OUT)) * 0.1,
        "conv2_b": jax.random.normal(ks[3], (CONV2_OUT,)) * 0.1,
        "w1": jax.random.normal(ks[4], (N_TREE, 320, N_HIDDEN)) * 0.1,
        "b1": jax.random.normal(ks[5], (N_TREE, 1, N_HIDDEN)) * 0.1,
        "w2": jax.random.normal(ks[6], (N_TREE, N_HIDDEN, N_LEAF)) * 0.1,
        "b2": jax.random.normal(ks[7], (N_TREE, 1, N_LEAF)) * 0.1,
        "pi": jax.random.uniform(ks[8], (N_TREE, N_LEAF, N_LABEL),
                                 jnp.float32, -2.0, 2.0),
    }


def ndf_forward(x_nchw, prep):
    n = x_nchw.shape[0]
    # NCHW -> lane-dense (N, H, W*Cin)
    x3 = jnp.transpose(x_nchw, (0, 2, 3, 1)).reshape(n, IN_H, -1)
    h1 = conv_relu_pool(x3, prep["tz1"], prep["bt1"])   # (N, 12, 12*10)
    h2 = conv_relu_pool(h1, prep["tz2"], prep["bt2"])   # (N,  4,  4*20)
    # flatten in PyTorch NCHW order (C, H, W) so tree weights keep their meaning
    ph2 = h2.shape[1]
    pw2 = h2.shape[2] // CONV2_OUT
    feat = jnp.transpose(h2.reshape(n, ph2, pw2, CONV2_OUT),
                         (0, 3, 1, 2)).reshape(n, -1)    # (N, 320)
    return forest_head(feat, prep)


# -----------------------------------------------------------------------------
# Pure-JAX/XLA reference with the same bf16-matmul / f32-accumulate policy
# -----------------------------------------------------------------------------
def ndf_reference(x_nchw, p):
    bf16, f32 = jnp.bfloat16, jnp.float32
    x = jnp.transpose(x_nchw, (0, 2, 3, 1))

    def conv_block(z, w, b):
        y = jax.lax.conv_general_dilated(
            z.astype(bf16), jnp.asarray(w).astype(bf16), (1, 1), "VALID",
            dimension_numbers=("NHWC", "HWIO", "NHWC"),
            preferred_element_type=f32)
        y = jnp.maximum(y + b, 0.0)
        return jax.lax.reduce_window(y, -jnp.inf, jax.lax.max,
                                     (1, 2, 2, 1), (1, 2, 2, 1), "VALID")

    h1 = conv_block(x, p["conv1_w"], p["conv1_b"])
    h2 = conv_block(h1, p["conv2_w"], p["conv2_b"])
    feat = jnp.transpose(h2, (0, 3, 1, 2)).reshape(x.shape[0], -1)

    n = feat.shape[0]
    hp = jax.lax.Precision.HIGHEST
    leaves = np.arange(N_LEAF)
    py_x = jnp.zeros((n, N_LABEL), f32)
    for t in range(N_TREE):
        h = jnp.maximum(
            jnp.dot(feat.astype(bf16), p["w1"][t].astype(bf16),
                    preferred_element_type=f32) + p["b1"][t], 0.0)
        logits = jnp.dot(h.astype(bf16), p["w2"][t].astype(bf16),
                         preferred_element_type=f32) + p["b2"][t]
        d = 1.0 / (1.0 + jnp.exp(-logits))
        mu = jnp.ones((n, N_LEAF), f32)
        for dpt in range(N_DEPTH + 1):
            node = (2 ** dpt - 1) + leaves // (2 ** (N_DEPTH - dpt + 1))
            left = (leaves // (2 ** (N_DEPTH - dpt))) % 2 == 0
            g = d[:, node]
            mu = mu * jnp.where(left[None, :], g, 1.0 - g)
        leaf_p = jax.nn.softmax(p["pi"][t], axis=-1)
        py_x = py_x + jnp.dot(mu, leaf_p, precision=hp) / N_LEAF / N_TREE
    return jnp.log(py_x)


if __name__ == "__main__":
    key = jax.random.PRNGKey(0)
    pkey, xkey = jax.random.split(key)
    params = init_params(pkey)
    prep = prepare_params(params)                    # parameter-only preprocessing
    x = jax.random.normal(xkey, (2, 1, IN_H, IN_W), jnp.float32)  # NCHW, MNIST-sized

    out = jax.jit(ndf_forward)(x, prep)
    out = jax.block_until_ready(out)

    ref = ndf_reference(x, params)
    np.testing.assert_allclose(np.asarray(out), np.asarray(ref),
                               rtol=5e-3, atol=5e-3)
    assert out.shape == (2, N_LABEL)
    print("KERNEL_OK")
</pallas_src>

<mosaic_0001>
module attributes {stable_mosaic.version = 11 : i64} {
  func.func @_conv_relu_pool_kernel(%arg0: i32, %arg1: memref<1x6x120xf32, #tpu.memory_space<vmem>>, %arg2: memref<1x6x120xf32, #tpu.memory_space<vmem>>, %arg3: memref<10x120x80xbf16, #tpu.memory_space<vmem>>, %arg4: memref<1x80xf32, #tpu.memory_space<vmem>>, %arg5: memref<1x4x80xf32, #tpu.memory_space<vmem>>) attributes {dimension_semantics = [#tpu.dimension_semantics<parallel>], iteration_bounds = array<i64: 2>, scalar_prefetch = 0 : i64, scratch_operands = 0 : i64, tpu.core_type = #tpu.core_type<tc>, window_params = [{transform_indices = @transform_0, window_bounds = array<i64: 1, 6, 120>}, {transform_indices = @transform_1, window_bounds = array<i64: 1, 6, 120>}, {pipeline_mode = #tpu.pipeline_mode<synchronous>, transform_indices = @transform_2, window_bounds = array<i64: 10, 120, 80>}, {pipeline_mode = #tpu.pipeline_mode<synchronous>, transform_indices = @transform_3, window_bounds = array<i64: 1, 80>}, {transform_indices = @transform_4, window_bounds = array<i64: 1, 4, 80>}]} {
    %c0 = arith.constant 0 : index
    %c0_0 = arith.constant 0 : index
    %0 = vector.load %arg4[%c0, %c0_0] : memref<1x80xf32, #tpu.memory_space<vmem>>, vector<1x80xf32>
    %c0_1 = arith.constant 0 : index
    %c0_2 = arith.constant 0 : index
    %c0_3 = arith.constant 0 : index
    %1 = vector.load %arg1[%c0_1, %c0_2, %c0_3] : memref<1x6x120xf32, #tpu.memory_space<vmem>>, vector<1x4x120xf32>
    %2 = vector.shape_cast %1 : vector<1x4x120xf32> to vector<4x120xf32>
    %3 = arith.truncf %2 : vector<4x120xf32> to vector<4x120xbf16>
    %c0_4 = arith.constant 0 : index
    %c0_5 = arith.constant 0 : index
    %c0_6 = arith.constant 0 : index
    %4 = vector.load %arg3[%c0_4, %c0_5, %c0_6] : memref<10x120x80xbf16, #tpu.memory_space<vmem>>, vector<1x120x80xbf16>
    %5 = vector.shape_cast %4 : vector<1x120x80xbf16> to vector<120x80xbf16>
    %cst = arith.constant dense<0.000000e+00> : vector<4x80xf32>
    %6 = tpu.matmul %3, %5, %cst {dimension_numbers = #tpu.dot_dimension_numbers<[1], [0], [0], [1], [0, 0, 1, 1], [], []>} : vector<4x120xbf16>, vector<120x80xbf16>, vector<4x80xf32> -> vector<4x80xf32>
    %c5 = arith.constant 5 : index
    %c0_7 = arith.constant 0 : index
    %c0_8 = arith.constant 0 : index
    %7 = vector.load %arg3[%c5, %c0_7, %c0_8] : memref<10x120x80xbf16, #tpu.memory_space<vmem>>, vector<1x120x80xbf16>
    %8 = vector.shape_cast %7 : vector<1x120x80xbf16> to vector<120x80xbf16>
    %cst_9 = arith.constant dense<0.000000e+00> : vector<4x80xf32>
    %9 = tpu.matmul %3, %8, %cst_9 {dimension_numbers = #tpu.dot_dimension_numbers<[1], [0], [0], [1], [0, 0, 1, 1], [], []>} : vector<4x120xbf16>, vector<120x80xbf16>, vector<4x80xf32> -> vector<4x80xf32>
    %c0_10 = arith.constant 0 : index
    %c0_11 = arith.constant 0 : index
    %c0_12 = arith.constant 0 : index
    %10 = vector.load %arg2[%c0_10, %c0_11, %c0_12] : memref<1x6x120xf32, #tpu.memory_space<vmem>>, vector<1x4x120xf32>
    %11 = vector.shape_cast %10 : vector<1x4x120xf32> to vector<4x120xf32>
    %12 = arith.truncf %11 : vector<4x120xf32> to vector<4x120xbf16>
    %c1 = arith.constant 1 : index
    %c0_13 = arith.constant 0 : index
    %c0_14 = arith.constant 0 : index
    %13 = vector.load %arg3[%c1, %c0_13, %c0_14] : memref<10x120x80xbf16, #tpu.memory_space<vmem>>, vector<1x120x80xbf16>
    %14 = vector.shape_cast %13 : vector<1x120x80xbf16> to vector<120x80xbf16>
    %cst_15 = arith.constant dense<0.000000e+00> : vector<4x80xf32>
    %15 = tpu.matmul %12, %14, %cst_15 {dimension_numbers = #tpu.dot_dimension_numbers<[1], [0], [0], [1], [0, 0, 1, 1], [], []>} : vector<4x120xbf16>, vector<120x80xbf16>, vector<4x80xf32> -> vector<4x80xf32>
    %16 = arith.addf %6, %15 : vector<4x80xf32>
    %c6 = arith.constant 6 : index
    %c0_16 = arith.constant 0 : index
    %c0_17 = arith.constant 0 : index
    %17 = vector.load %arg3[%c6, %c0_16, %c0_17] : memref<10x120x80xbf16, #tpu.memory_space<vmem>>, vector<1x120x80xbf16>
    %18 = vector.shape_cast %17 : vector<1x120x80xbf16> to vector<120x80xbf16>
    %cst_18 = arith.constant dense<0.000000e+00> : vector<4x80xf32>
    %19 = tpu.matmul %12, %18, %cst_18 {dimension_numbers = #tpu.dot_dimension_numbers<[1], [0], [0], [1], [0, 0, 1, 1], [], []>} : vector<4x120xbf16>, vector<120x80xbf16>, vector<4x80xf32> -> vector<4x80xf32>
    %20 = arith.addf %9, %19 : vector<4x80xf32>
    %c0_19 = arith.constant 0 : index
    %c1_20 = arith.constant 1 : index
    %c0_21 = arith.constant 0 : index
    %21 = vector.load %arg1[%c0_19, %c1_20, %c0_21] : memref<1x6x120xf32, #tpu.memory_space<vmem>>, vector<1x4x120xf32>
    %22 = vector.shape_cast %21 : vector<1x4x120xf32> to vector<4x120xf32>
    %23 = arith.truncf %22 : vector<4x120xf32> to vector<4x120xbf16>
    %c2 = arith.constant 2 : index
    %c0_22 = arith.constant 0 : index
    %c0_23 = arith.constant 0 : index
    %24 = vector.load %arg3[%c2, %c0_22, %c0_23] : memref<10x120x80xbf16, #tpu.memory_space<vmem>>, vector<1x120x80xbf16>
    %25 = vector.shape_cast %24 : vector<1x120x80xbf16> to vector<120x80xbf16>
    %cst_24 = arith.constant dense<0.000000e+00> : vector<4x80xf32>
    %26 = tpu.matmul %23, %25, %cst_24 {dimension_numbers = #tpu.dot_dimension_numbers<[1], [0], [0], [1], [0, 0, 1, 1], [], []>} : vector<4x120xbf16>, vector<120x80xbf16>, vector<4x80xf32> -> vector<4x80xf32>
    %27 = arith.addf %16, %26 : vector<4x80xf32>
    %c7 = arith.constant 7 : index
    %c0_25 = arith.constant 0 : index
    %c0_26 = arith.constant 0 : index
    %28 = vector.load %arg3[%c7, %c0_25, %c0_26] : memref<10x120x80xbf16, #tpu.memory_space<vmem>>, vector<1x120x80xbf16>
    %29 = vector.shape_cast %28 : vector<1x120x80xbf16> to vector<120x80xbf16>
    %cst_27 = arith.constant dense<0.000000e+00> : vector<4x80xf32>
    %30 = tpu.matmul %23, %29, %cst_27 {dimension_numbers = #tpu.dot_dimension_numbers<[1], [0], [0], [1], [0, 0, 1, 1], [], []>} : vector<4x120xbf16>, vector<120x80xbf16>, vector<4x80xf32> -> vector<4x80xf32>
    %31 = arith.addf %20, %30 : vector<4x80xf32>
    %c0_28 = arith.constant 0 : index
    %c1_29 = arith.constant 1 : index
    %c0_30 = arith.constant 0 : index
    %32 = vector.load %arg2[%c0_28, %c1_29, %c0_30] : memref<1x6x120xf32, #tpu.memory_space<vmem>>, vector<1x4x120xf32>
    %33 = vector.shape_cast %32 : vector<1x4x120xf32> to vector<4x120xf32>
    %34 = arith.truncf %33 : vector<4x120xf32> to vector<4x120xbf16>
    %c3 = arith.constant 3 : index
    %c0_31 = arith.constant 0 : index
    %c0_32 = arith.constant 0 : index
    %35 = vector.load %arg3[%c3, %c0_31, %c0_32] : memref<10x120x80xbf16, #tpu.memory_space<vmem>>, vector<1x120x80xbf16>
    %36 = vector.shape_cast %35 : vector<1x120x80xbf16> to vector<120x80xbf16>
    %cst_33 = arith.constant dense<0.000000e+00> : vector<4x80xf32>
    %37 = tpu.matmul %34, %36, %cst_33 {dimension_numbers = #tpu.dot_dimension_numbers<[1], [0], [0], [1], [0, 0, 1, 1], [], []>} : vector<4x120xbf16>, vector<120x80xbf16>, vector<4x80xf32> -> vector<4x80xf32>
    %38 = arith.addf %27, %37 : vector<4x80xf32>
    %c8 = arith.constant 8 : index
    %c0_34 = arith.constant 0 : index
    %c0_35 = arith.constant 0 : index
    %39 = vector.load %arg3[%c8, %c0_34, %c0_35] : memref<10x120x80xbf16, #tpu.memory_space<vmem>>, vector<1x120x80xbf16>
    %40 = vector.shape_cast %39 : vector<1x120x80xbf16> to vector<120x80xbf16>
    %cst_36 = arith.constant dense<0.000000e+00> : vector<4x80xf32>
    %41 = tpu.matmul %34, %40, %cst_36 {dimension_numbers = #tpu.dot_dimension_numbers<[1], [0], [0], [1], [0, 0, 1, 1], [], []>} : vector<4x120xbf16>, vector<120x80xbf16>, vector<4x80xf32> -> vector<4x80xf32>
    %42 = arith.addf %31, %41 : vector<4x80xf32>
    %c0_37 = arith.constant 0 : index
    %c2_38 = arith.constant 2 : index
    %c0_39 = arith.constant 0 : index
    %43 = vector.load %arg1[%c0_37, %c2_38, %c0_39] : memref<1x6x120xf32, #tpu.memory_space<vmem>>, vector<1x4x120xf32>
    %44 = vector.shape_cast %43 : vector<1x4x120xf32> to vector<4x120xf32>
    %45 = arith.truncf %44 : vector<4x120xf32> to vector<4x120xbf16>
    %c4 = arith.constant 4 : index
    %c0_40 = arith.constant 0 : index
    %c0_41 = arith.constant 0 : index
    %46 = vector.load %arg3[%c4, %c0_40, %c0_41] : memref<10x120x80xbf16, #tpu.memory_space<vmem>>, vector<1x120x80xbf16>
    %47 = vector.shape_cast %46 : vector<1x120x80xbf16> to vector<120x80xbf16>
    %cst_42 = arith.constant dense<0.000000e+00> : vector<4x80xf32>
    %48 = tpu.matmul %45, %47, %cst_42 {dimension_numbers = #tpu.dot_dimension_numbers<[1], [0], [0], [1], [0, 0, 1, 1], [], []>} : vector<4x120xbf16>, vector<120x80xbf16>, vector<4x80xf32> -> vector<4x80xf32>
    %49 = arith.addf %38, %48 : vector<4x80xf32>
    %c9 = arith.constant 9 : index
    %c0_43 = arith.constant 0 : index
    %c0_44 = arith.constant 0 : index
    %50 = vector.load %arg3[%c9, %c0_43, %c0_44] : memref<10x120x80xbf16, #tpu.memory_space<vmem>>, vector<1x120x80xbf16>
    %51 = vector.shape_cast %50 : vector<1x120x80xbf16> to vector<120x80xbf16>
    %cst_45 = arith.constant dense<0.000000e+00> : vector<4x80xf32>
    %52 = tpu.matmul %45, %51, %cst_45 {dimension_numbers = #tpu.dot_dimension_numbers<[1], [0], [0], [1], [0, 0, 1, 1], [], []>} : vector<4x120xbf16>, vector<120x80xbf16>, vector<4x80xf32> -> vector<4x80xf32>
    %53 = arith.addf %42, %52 : vector<4x80xf32>
    %54 = vector.broadcast %0 : vector<1x80xf32> to vector<4x80xf32>
    %55 = arith.addf %49, %54 : vector<4x80xf32>
    %cst_46 = arith.constant 0.000000e+00 : f32
    %56 = vector.broadcast %cst_46 : f32 to vector<4x80xf32>
    %57 = arith.maximumf %55, %56 : vector<4x80xf32>
    %58 = vector.broadcast %0 : vector<1x80xf32> to vector<4x80xf32>
    %59 = arith.addf %53, %58 : vector<4x80xf32>
    %cst_47 = arith.constant 0.000000e+00 : f32
    %60 = vector.broadcast %cst_47 : f32 to vector<4x80xf32>
    %61 = arith.maximumf %59, %60 : vector<4x80xf32>
    %62 = arith.maximumf %57, %61 : vector<4x80xf32>
    %c0_48 = arith.constant 0 : index
    %c0_49 = arith.constant 0 : index
    %c0_50 = arith.constant 0 : index
    %63 = vector.load %arg2[%c0_48, %c0_49, %c0_50] : memref<1x6x120xf32, #tpu.memory_space<vmem>>, vector<1x4x120xf32>
    %64 = vector.shape_cast %63 : vector<1x4x120xf32> to vector<4x120xf32>
    %65 = arith.truncf %64 : vector<4x120xf32> to vector<4x120xbf16>
    %c0_51 = arith.constant 0 : index
    %c0_52 = arith.constant 0 : index
    %c0_53 = arith.constant 0 : index
    %66 = vector.load %arg3[%c0_51, %c0_52, %c0_53] : memref<10x120x80xbf16, #tpu.memory_space<vmem>>, vector<1x120x80xbf16>
    %67 = vector.shape_cast %66 : vector<1x120x80xbf16> to vector<120x80xbf16>
    %cst_54 = arith.constant dense<0.000000e+00> : vector<4x80xf32>
    %68 = tpu.matmul %65, %67, %cst_54 {dimension_numbers = #tpu.dot_dimension_numbers<[1], [0], [0], [1], [0, 0, 1, 1], [], []>} : vector<4x120xbf16>, vector<120x80xbf16>, vector<4x80xf32> -> vector<4x80xf32>
    %c5_55 = arith.constant 5 : index
    %c0_56 = arith.constant 0 : index
    %c0_57 = arith.constant 0 : index
    %69 = vector.load %arg3[%c5_55, %c0_56, %c0_57] : memref<10x120x80xbf16, #tpu.memory_space<vmem>>, vector<1x120x80xbf16>
    %70 = vector.shape_cast %69 : vector<1x120x80xbf16> to vector<120x80xbf16>
    %cst_58 = arith.constant dense<0.000000e+00> : vector<4x80xf32>
    %71 = tpu.matmul %65, %70, %cst_58 {dimension_numbers = #tpu.dot_dimension_numbers<[1], [0], [0], [1], [0, 0, 1, 1], [], []>} : vector<4x120xbf16>, vector<120x80xbf16>, vector<4x80xf32> -> vector<4x80xf32>
    %c0_59 = arith.constant 0 : index
    %c1_60 = arith.constant 1 : index
    %c0_61 = arith.constant 0 : index
    %72 = vector.load %arg1[%c0_59, %c1_60, %c0_61] : memref<1x6x120xf32, #tpu.memory_space<vmem>>, vector<1x4x120xf32>
    %73 = vector.shape_cast %72 : vector<1x4x120xf32> to vector<4x120xf32>
    %74 = arith.truncf %73 : vector<4x120xf32> to vector<4x120xbf16>
    %c1_62 = arith.constant 1 : index
    %c0_63 = arith.constant 0 : index
    %c0_64 = arith.constant 0 : index
    %75 = vector.load %arg3[%c1_62, %c0_63, %c0_64] : memref<10x120x80xbf16, #tpu.memory_space<vmem>>, vector<1x120x80xbf16>
    %76 = vector.shape_cast %75 : vector<1x120x80xbf16> to vector<120x80xbf16>
    %cst_65 = arith.constant dense<0.000000e+00> : vector<4x80xf32>
    %77 = tpu.matmul %74, %76, %cst_65 {dimension_numbers = #tpu.dot_dimension_numbers<[1], [0], [0], [1], [0, 0, 1, 1], [], []>} : vector<4x120xbf16>, vector<120x80xbf16>, vector<4x80xf32> -> vector<4x80xf32>
    %78 = arith.addf %68, %77 : vector<4x80xf32>
    %c6_66 = arith.constant 6 : index
    %c0_67 = arith.constant 0 : index
    %c0_68 = arith.constant 0 : index
    %79 = vector.load %arg3[%c6_66, %c0_67, %c0_68] : memref<10x120x80xbf16, #tpu.memory_space<vmem>>, vector<1x120x80xbf16>
    %80 = vector.shape_cast %79 : vector<1x120x80xbf16> to vector<120x80xbf16>
    %cst_69 = arith.constant dense<0.000000e+00> : vector<4x80xf32>
    %81 = tpu.matmul %74, %80, %cst_69 {dimension_numbers = #tpu.dot_dimension_numbers<[1], [0], [0], [1], [0, 0, 1, 1], [], []>} : vector<4x120xbf16>, vector<120x80xbf16>, vector<4x80xf32> -> vector<4x80xf32>
    %82 = arith.addf %71, %81 : vector<4x80xf32>
    %c0_70 = arith.constant 0 : index
    %c1_71 = arith.constant 1 : index
    %c0_72 = arith.constant 0 : index
    %83 = vector.load %arg2[%c0_70, %c1_71, %c0_72] : memref<1x6x120xf32, #tpu.memory_space<vmem>>, vector<1x4x120xf32>
    %84 = vector.shape_cast %83 : vector<1x4x120xf32> to vector<4x120xf32>
    %85 = arith.truncf %84 : vector<4x120xf32> to vector<4x120xbf16>
    %c2_73 = arith.constant 2 : index
    %c0_74 = arith.constant 0 : index
    %c0_75 = arith.constant 0 : index
    %86 = vector.load %arg3[%c2_73, %c0_74, %c0_75] : memref<10x120x80xbf16, #tpu.memory_space<vmem>>, vector<1x120x80xbf16>
    %87 = vector.shape_cast %86 : vector<1x120x80xbf16> to vector<120x80xbf16>
    %cst_76 = arith.constant dense<0.000000e+00> : vector<4x80xf32>
    %88 = tpu.matmul %85, %87, %cst_76 {dimension_numbers = #tpu.dot_dimension_numbers<[1], [0], [0], [1], [0, 0, 1, 1], [], []>} : vector<4x120xbf16>, vector<120x80xbf16>, vector<4x80xf32> -> vector<4x80xf32>
    %89 = arith.addf %78, %88 : vector<4x80xf32>
    %c7_77 = arith.constant 7 : index
    %c0_78 = arith.constant 0 : index
    %c0_79 = arith.constant 0 : index
    %90 = vector.load %arg3[%c7_77, %c0_78, %c0_79] : memref<10x120x80xbf16, #tpu.memory_space<vmem>>, vector<1x120x80xbf16>
    %91 = vector.shape_cast %90 : vector<1x120x80xbf16> to vector<120x80xbf16>
    %cst_80 = arith.constant dense<0.000000e+00> : vector<4x80xf32>
    %92 = tpu.matmul %85, %91, %cst_80 {dimension_numbers = #tpu.dot_dimension_numbers<[1], [0], [0], [1], [0, 0, 1, 1], [], []>} : vector<4x120xbf16>, vector<120x80xbf16>, vector<4x80xf32> -> vector<4x80xf32>
    %93 = arith.addf %82, %92 : vector<4x80xf32>
    %c0_81 = arith.constant 0 : index
    %c2_82 = arith.constant 2 : index
    %c0_83 = arith.constant 0 : index
    %94 = vector.load %arg1[%c0_81, %c2_82, %c0_83] : memref<1x6x120xf32, #tpu.memory_space<vmem>>, vector<1x4x120xf32>
    %95 = vector.shape_cast %94 : vector<1x4x120xf32> to vector<4x120xf32>
    %96 = arith.truncf %95 : vector<4x120xf32> to vector<4x120xbf16>
    %c3_84 = arith.constant 3 : index
    %c0_85 = arith.constant 0 : index
    %c0_86 = arith.constant 0 : index
    %97 = vector.load %arg3[%c3_84, %c0_85, %c0_86] : memref<10x120x80xbf16, #tpu.memory_space<vmem>>, vector<1x120x80xbf16>
    %98 = vector.shape_cast %97 : vector<1x120x80xbf16> to vector<120x80xbf16>
    %cst_87 = arith.constant dense<0.000000e+00> : vector<4x80xf32>
    %99 = tpu.matmul %96, %98, %cst_87 {dimension_numbers = #tpu.dot_dimension_numbers<[1], [0], [0], [1], [0, 0, 1, 1], [], []>} : vector<4x120xbf16>, vector<120x80xbf16>, vector<4x80xf32> -> vector<4x80xf32>
    %100 = arith.addf %89, %99 : vector<4x80xf32>
    %c8_88 = arith.constant 8 : index
    %c0_89 = arith.constant 0 : index
    %c0_90 = arith.constant 0 : index
    %101 = vector.load %arg3[%c8_88, %c0_89, %c0_90] : memref<10x120x80xbf16, #tpu.memory_space<vmem>>, vector<1x120x80xbf16>
    %102 = vector.shape_cast %101 : vector<1x120x80xbf16> to vector<120x80xbf16>
    %cst_91 = arith.constant dense<0.000000e+00> : vector<4x80xf32>
    %103 = tpu.matmul %96, %102, %cst_91 {dimension_numbers = #tpu.dot_dimension_numbers<[1], [0], [0], [1], [0, 0, 1, 1], [], []>} : vector<4x120xbf16>, vector<120x80xbf16>, vector<4x80xf32> -> vector<4x80xf32>
    %104 = arith.addf %93, %103 : vector<4x80xf32>
    %c0_92 = arith.constant 0 : index
    %c2_93 = arith.constant 2 : index
    %c0_94 = arith.constant 0 : index
    %105 = vector.load %arg2[%c0_92, %c2_93, %c0_94] : memref<1x6x120xf32, #tpu.memory_space<vmem>>, vector<1x4x120xf32>
    %106 = vector.shape_cast %105 : vector<1x4x120xf32> to vector<4x120xf32>
    %107 = arith.truncf %106 : vector<4x120xf32> to vector<4x120xbf16>
    %c4_95 = arith.constant 4 : index
    %c0_96 = arith.constant 0 : index
    %c0_97 = arith.constant 0 : index
    %108 = vector.load %arg3[%c4_95, %c0_96, %c0_97] : memref<10x120x80xbf16, #tpu.memory_space<vmem>>, vector<1x120x80xbf16>
    %109 = vector.shape_cast %108 : vector<1x120x80xbf16> to vector<120x80xbf16>
    %cst_98 = arith.constant dense<0.000000e+00> : vector<4x80xf32>
    %110 = tpu.matmul %107, %109, %cst_98 {dimension_numbers = #tpu.dot_dimension_numbers<[1], [0], [0], [1], [0, 0, 1, 1], [], []>} : vector<4x120xbf16>, vector<120x80xbf16>, vector<4x80xf32> -> vector<4x80xf32>
    %111 = arith.addf %100, %110 : vector<4x80xf32>
    %c9_99 = arith.constant 9 : index
    %c0_100 = arith.constant 0 : index
    %c0_101 = arith.constant 0 : index
    %112 = vector.load %arg3[%c9_99, %c0_100, %c0_101] : memref<10x120x80xbf16, #tpu.memory_space<vmem>>, vector<1x120x80xbf16>
    %113 = vector.shape_cast %112 : vector<1x120x80xbf16> to vector<120x80xbf16>
    %cst_102 = arith.constant dense<0.000000e+00> : vector<4x80xf32>
    %114 = tpu.matmul %107, %113, %cst_102 {dimension_numbers = #tpu.dot_dimension_numbers<[1], [0], [0], [1], [0, 0, 1, 1], [], []>} : vector<4x120xbf16>, vector<120x80xbf16>, vector<4x80xf32> -> vector<4x80xf32>
    %115 = arith.addf %104, %114 : vector<4x80xf32>
    %116 = vector.broadcast %0 : vector<1x80xf32> to vector<4x80xf32>
    %117 = arith.addf %111, %116 : vector<4x80xf32>
    %cst_103 = arith.constant 0.000000e+00 : f32
    %118 = vector.broadcast %cst_103 : f32 to vector<4x80xf32>
    %119 = arith.maximumf %117, %118 : vector<4x80xf32>
    %120 = arith.maximumf %62, %119 : vector<4x80xf32>
    %121 = vector.broadcast %0 : vector<1x80xf32> to vector<4x80xf32>
    %122 = arith.addf %115, %121 : vector<4x80xf32>
    %cst_104 = arith.constant 0.000000e+00 : f32
    %123 = vector.broadcast %cst_104 : f32 to vector<4x80xf32>
    %124 = arith.maximumf %122, %123 : vector<4x80xf32>
    %125 = arith.maximumf %120, %124 : vector<4x80xf32>
    %c0_105 = arith.constant 0 : index
    %c0_106 = arith.constant 0 : index
    %c0_107 = arith.constant 0 : index
    %126 = vector.load %arg5[%c0_105, %c0_106, %c0_107] : memref<1x4x80xf32, #tpu.memory_space<vmem>>, vector<1x4x80xf32>
    %127 = vector.shape_cast %126 : vector<1x4x80xf32> to vector<4x80xf32>
    %128 = vector.shape_cast %125 : vector<4x80xf32> to vector<1x4x80xf32>
    tpu.vector_store %arg5[%c0_105, %c0_106, %c0_107], %128 {strides = array<i32>} : memref<1x4x80xf32, #tpu.memory_space<vmem>>, vector<1x4x80xf32>,
    return
  }
  func.func @transform_0(%arg0: i32) -> (i32, i32, i32) {
    %c0_i32 = arith.constant 0 : i32
    %c0_i32_0 = arith.constant 0 : i32
    %c0_i32_1 = arith.constant 0 : i32
    return %arg0, %c0_i32, %c0_i32_0 : i32, i32, i32
  }
  func.func @transform_1(%arg0: i32) -> (i32, i32, i32) {
    %c0_i32 = arith.constant 0 : i32
    %c0_i32_0 = arith.constant 0 : i32
    %c0_i32_1 = arith.constant 0 : i32
    return %arg0, %c0_i32, %c0_i32_0 : i32, i32, i32
  }
  func.func @transform_2(%arg0: i32) -> (i32, i32, i32) {
    %c0_i32 = arith.constant 0 : i32
    %c0_i32_0 = arith.constant 0 : i32
    %c0_i32_1 = arith.constant 0 : i32
    %c0_i32_2 = arith.constant 0 : i32
    return %c0_i32, %c0_i32_0, %c0_i32_1 : i32, i32, i32
  }
  func.func @transform_3(%arg0: i32) -> (i32, i32) {
    %c0_i32 = arith.constant 0 : i32
    %c0_i32_0 = arith.constant 0 : i32
    %c0_i32_1 = arith.constant 0 : i32
    return %c0_i32, %c0_i32_0 : i32, i32
  }
  func.func @transform_4(%arg0: i32) -> (i32, i32, i32) {
    %c0_i32 = arith.constant 0 : i32
    %c0_i32_0 = arith.constant 0 : i32
    %c0_i32_1 = arith.constant 0 : i32
    return %arg0, %c0_i32, %c0_i32_0 : i32, i32, i32
  }
}

module attributes {stable_mosaic.version = 11 : i64} {
  func.func @_conv_relu_pool_kernel(%arg0: i32, %arg1: memref<1x14x28xf32, #tpu.memory_space<vmem>>, %arg2: memref<1x14x28xf32, #tpu.memory_space<vmem>>, %arg3: memref<10x28x120xbf16, #tpu.memory_space<vmem>>, %arg4: memref<1x120xf32, #tpu.memory_space<vmem>>, %arg5: memref<1x12x120xf32, #tpu.memory_space<vmem>>) attributes {dimension_semantics = [#tpu.dimension_semantics<parallel>], iteration_bounds = array<i64: 2>, scalar_prefetch = 0 : i64, scratch_operands = 0 : i64, tpu.core_type = #tpu.core_type<tc>, window_params = [{transform_indices = @transform_0, window_bounds = array<i64: 1, 14, 28>}, {transform_indices = @transform_1, window_bounds = array<i64: 1, 14, 28>}, {pipeline_mode = #tpu.pipeline_mode<synchronous>, transform_indices = @transform_2, window_bounds = array<i64: 10, 28, 120>}, {pipeline_mode = #tpu.pipeline_mode<synchronous>, transform_indices = @transform_3, window_bounds = array<i64: 1, 120>}, {transform_indices = @transform_4, window_bounds = array<i64: 1, 12, 120>}]} {
    %c0 = arith.constant 0 : index
    %c0_0 = arith.constant 0 : index
    %0 = vector.load %arg4[%c0, %c0_0] : memref<1x120xf32, #tpu.memory_space<vmem>>, vector<1x120xf32>
    %c0_1 = arith.constant 0 : index
    %c0_2 = arith.constant 0 : index
    %c0_3 = arith.constant 0 : index
    %1 = vector.load %arg1[%c0_1, %c0_2, %c0_3] : memref<1x14x28xf32, #tpu.memory_space<vmem>>, vector<1x12x28xf32>
    %2 = vector.shape_cast %1 : vector<1x12x28xf32> to vector<12x28xf32>
    %3 = arith.truncf %2 : vector<12x28xf32> to vector<12x28xbf16>
    %c0_4 = arith.constant 0 : index
    %c0_5 = arith.constant 0 : index
    %c0_6 = arith.constant 0 : index
    %4 = vector.load %arg3[%c0_4, %c0_5, %c0_6] : memref<10x28x120xbf16, #tpu.memory_space<vmem>>, vector<1x28x120xbf16>
    %5 = vector.shape_cast %4 : vector<1x28x120xbf16> to vector<28x120xbf16>
    %cst = arith.constant dense<0.000000e+00> : vector<12x120xf32>
    %6 = tpu.matmul %3, %5, %cst {dimension_numbers = #tpu.dot_dimension_numbers<[1], [0], [0], [1], [0, 0, 1, 1], [], []>} : vector<12x28xbf16>, vector<28x120xbf16>, vector<12x120xf32> -> vector<12x120xf32>
    %c5 = arith.constant 5 : index
    %c0_7 = arith.constant 0 : index
    %c0_8 = arith.constant 0 : index
    %7 = vector.load %arg3[%c5, %c0_7, %c0_8] : memref<10x28x120xbf16, #tpu.memory_space<vmem>>, vector<1x28x120xbf16>
    %8 = vector.shape_cast %7 : vector<1x28x120xbf16> to vector<28x120xbf16>
    %cst_9 = arith.constant dense<0.000000e+00> : vector<12x120xf32>
    %9 = tpu.matmul %3, %8, %cst_9 {dimension_numbers = #tpu.dot_dimension_numbers<[1], [0], [0], [1], [0, 0, 1, 1], [], []>} : vector<12x28xbf16>, vector<28x120xbf16>, vector<12x120xf32> -> vector<12x120xf32>
    %c0_10 = arith.constant 0 : index
    %c0_11 = arith.constant 0 : index
    %c0_12 = arith.constant 0 : index
    %10 = vector.load %arg2[%c0_10, %c0_11, %c0_12] : memref<1x14x28xf32, #tpu.memory_space<vmem>>, vector<1x12x28xf32>
    %11 = vector.shape_cast %10 : vector<1x12x28xf32> to vector<12x28xf32>
    %12 = arith.truncf %11 : vector<12x28xf32> to vector<12x28xbf16>
    %c1 = arith.constant 1 : index
    %c0_13 = arith.constant 0 : index
    %c0_14 = arith.constant 0 : index
    %13 = vector.load %arg3[%c1, %c0_13, %c0_14] : memref<10x28x120xbf16, #tpu.memory_space<vmem>>, vector<1x28x120xbf16>
    %14 = vector.shape_cast %13 : vector<1x28x120xbf16> to vector<28x120xbf16>
    %cst_15 = arith.constant dense<0.000000e+00> : vector<12x120xf32>
    %15 = tpu.matmul %12, %14, %cst_15 {dimension_numbers = #tpu.dot_dimension_numbers<[1], [0], [0], [1], [0, 0, 1, 1], [], []>} : vector<12x28xbf16>, vector<28x120xbf16>, vector<12x120xf32> -> vector<12x120xf32>
    %16 = arith.addf %6, %15 : vector<12x120xf32>
    %c6 = arith.constant 6 : index
    %c0_16 = arith.constant 0 : index
    %c0_17 = arith.constant 0 : index
    %17 = vector.load %arg3[%c6, %c0_16, %c0_17] : memref<10x28x120xbf16, #tpu.memory_space<vmem>>, vector<1x28x120xbf16>
    %18 = vector.shape_cast %17 : vector<1x28x120xbf16> to vector<28x120xbf16>
    %cst_18 = arith.constant dense<0.000000e+00> : vector<12x120xf32>
    %19 = tpu.matmul %12, %18, %cst_18 {dimension_numbers = #tpu.dot_dimension_numbers<[1], [0], [0], [1], [0, 0, 1, 1], [], []>} : vector<12x28xbf16>, vector<28x120xbf16>, vector<12x120xf32> -> vector<12x120xf32>
    %20 = arith.addf %9, %19 : vector<12x120xf32>
    %c0_19 = arith.constant 0 : index
    %c1_20 = arith.constant 1 : index
    %c0_21 = arith.constant 0 : index
    %21 = vector.load %arg1[%c0_19, %c1_20, %c0_21] : memref<1x14x28xf32, #tpu.memory_space<vmem>>, vector<1x12x28xf32>
    %22 = vector.shape_cast %21 : vector<1x12x28xf32> to vector<12x28xf32>
    %23 = arith.truncf %22 : vector<12x28xf32> to vector<12x28xbf16>
    %c2 = arith.constant 2 : index
    %c0_22 = arith.constant 0 : index
    %c0_23 = arith.constant 0 : index
    %24 = vector.load %arg3[%c2, %c0_22, %c0_23] : memref<10x28x120xbf16, #tpu.memory_space<vmem>>, vector<1x28x120xbf16>
    %25 = vector.shape_cast %24 : vector<1x28x120xbf16> to vector<28x120xbf16>
    %cst_24 = arith.constant dense<0.000000e+00> : vector<12x120xf32>
    %26 = tpu.matmul %23, %25, %cst_24 {dimension_numbers = #tpu.dot_dimension_numbers<[1], [0], [0], [1], [0, 0, 1, 1], [], []>} : vector<12x28xbf16>, vector<28x120xbf16>, vector<12x120xf32> -> vector<12x120xf32>
    %27 = arith.addf %16, %26 : vector<12x120xf32>
    %c7 = arith.constant 7 : index
    %c0_25 = arith.constant 0 : index
    %c0_26 = arith.constant 0 : index
    %28 = vector.load %arg3[%c7, %c0_25, %c0_26] : memref<10x28x120xbf16, #tpu.memory_space<vmem>>, vector<1x28x120xbf16>
    %29 = vector.shape_cast %28 : vector<1x28x120xbf16> to vector<28x120xbf16>
    %cst_27 = arith.constant dense<0.000000e+00> : vector<12x120xf32>
    %30 = tpu.matmul %23, %29, %cst_27 {dimension_numbers = #tpu.dot_dimension_numbers<[1], [0], [0], [1], [0, 0, 1, 1], [], []>} : vector<12x28xbf16>, vector<28x120xbf16>, vector<12x120xf32> -> vector<12x120xf32>
    %31 = arith.addf %20, %30 : vector<12x120xf32>
    %c0_28 = arith.constant 0 : index
    %c1_29 = arith.constant 1 : index
    %c0_30 = arith.constant 0 : index
    %32 = vector.load %arg2[%c0_28, %c1_29, %c0_30] : memref<1x14x28xf32, #tpu.memory_space<vmem>>, vector<1x12x28xf32>
    %33 = vector.shape_cast %32 : vector<1x12x28xf32> to vector<12x28xf32>
    %34 = arith.truncf %33 : vector<12x28xf32> to vector<12x28xbf16>
    %c3 = arith.constant 3 : index
    %c0_31 = arith.constant 0 : index
    %c0_32 = arith.constant 0 : index
    %35 = vector.load %arg3[%c3, %c0_31, %c0_32] : memref<10x28x120xbf16, #tpu.memory_space<vmem>>, vector<1x28x120xbf16>
    %36 = vector.shape_cast %35 : vector<1x28x120xbf16> to vector<28x120xbf16>
    %cst_33 = arith.constant dense<0.000000e+00> : vector<12x120xf32>
    %37 = tpu.matmul %34, %36, %cst_33 {dimension_numbers = #tpu.dot_dimension_numbers<[1], [0], [0], [1], [0, 0, 1, 1], [], []>} : vector<12x28xbf16>, vector<28x120xbf16>, vector<12x120xf32> -> vector<12x120xf32>
    %38 = arith.addf %27, %37 : vector<12x120xf32>
    %c8 = arith.constant 8 : index
    %c0_34 = arith.constant 0 : index
    %c0_35 = arith.constant 0 : index
    %39 = vector.load %arg3[%c8, %c0_34, %c0_35] : memref<10x28x120xbf16, #tpu.memory_space<vmem>>, vector<1x28x120xbf16>
    %40 = vector.shape_cast %39 : vector<1x28x120xbf16> to vector<28x120xbf16>
    %cst_36 = arith.constant dense<0.000000e+00> : vector<12x120xf32>
    %41 = tpu.matmul %34, %40, %cst_36 {dimension_numbers = #tpu.dot_dimension_numbers<[1], [0], [0], [1], [0, 0, 1, 1], [], []>} : vector<12x28xbf16>, vector<28x120xbf16>, vector<12x120xf32> -> vector<12x120xf32>
    %42 = arith.addf %31, %41 : vector<12x120xf32>
    %c0_37 = arith.constant 0 : index
    %c2_38 = arith.constant 2 : index
    %c0_39 = arith.constant 0 : index
    %43 = vector.load %arg1[%c0_37, %c2_38, %c0_39] : memref<1x14x28xf32, #tpu.memory_space<vmem>>, vector<1x12x28xf32>
    %44 = vector.shape_cast %43 : vector<1x12x28xf32> to vector<12x28xf32>
    %45 = arith.truncf %44 : vector<12x28xf32> to vector<12x28xbf16>
    %c4 = arith.constant 4 : index
    %c0_40 = arith.constant 0 : index
    %c0_41 = arith.constant 0 : index
    %46 = vector.load %arg3[%c4, %c0_40, %c0_41] : memref<10x28x120xbf16, #tpu.memory_space<vmem>>, vector<1x28x120xbf16>
    %47 = vector.shape_cast %46 : vector<1x28x120xbf16> to vector<28x120xbf16>
    %cst_42 = arith.constant dense<0.000000e+00> : vector<12x120xf32>
    %48 = tpu.matmul %45, %47, %cst_42 {dimension_numbers = #tpu.dot_dimension_numbers<[1], [0], [0], [1], [0, 0, 1, 1], [], []>} : vector<12x28xbf16>, vector<28x120xbf16>, vector<12x120xf32> -> vector<12x120xf32>
    %49 = arith.addf %38, %48 : vector<12x120xf32>
    %c9 = arith.constant 9 : index
    %c0_43 = arith.constant 0 : index
    %c0_44 = arith.constant 0 : index
    %50 = vector.load %arg3[%c9, %c0_43, %c0_44] : memref<10x28x120xbf16, #tpu.memory_space<vmem>>, vector<1x28x120xbf16>
    %51 = vector.shape_cast %50 : vector<1x28x120xbf16> to vector<28x120xbf16>
    %cst_45 = arith.constant dense<0.000000e+00> : vector<12x120xf32>
    %52 = tpu.matmul %45, %51, %cst_45 {dimension_numbers = #tpu.dot_dimension_numbers<[1], [0], [0], [1], [0, 0, 1, 1], [], []>} : vector<12x28xbf16>, vector<28x120xbf16>, vector<12x120xf32> -> vector<12x120xf32>
    %53 = arith.addf %42, %52 : vector<12x120xf32>
    %54 = vector.broadcast %0 : vector<1x120xf32> to vector<12x120xf32>
    %55 = arith.addf %49, %54 : vector<12x120xf32>
    %cst_46 = arith.constant 0.000000e+00 : f32
    %56 = vector.broadcast %cst_46 : f32 to vector<12x120xf32>
    %57 = arith.maximumf %55, %56 : vector<12x120xf32>
    %58 = vector.broadcast %0 : vector<1x120xf32> to vector<12x120xf32>
    %59 = arith.addf %53, %58 : vector<12x120xf32>
    %cst_47 = arith.constant 0.000000e+00 : f32
    %60 = vector.broadcast %cst_47 : f32 to vector<12x120xf32>
    %61 = arith.maximumf %59, %60 : vector<12x120xf32>
    %62 = arith.maximumf %57, %61 : vector<12x120xf32>
    %c0_48 = arith.constant 0 : index
    %c0_49 = arith.constant 0 : index
    %c0_50 = arith.constant 0 : index
    %63 = vector.load %arg2[%c0_48, %c0_49, %c0_50] : memref<1x14x28xf32, #tpu.memory_space<vmem>>, vector<1x12x28xf32>
    %64 = vector.shape_cast %63 : vector<1x12x28xf32> to vector<12x28xf32>
    %65 = arith.truncf %64 : vector<12x28xf32> to vector<12x28xbf16>
    %c0_51 = arith.constant 0 : index
    %c0_52 = arith.constant 0 : index
    %c0_53 = arith.constant 0 : index
    %66 = vector.load %arg3[%c0_51, %c0_52, %c0_53] : memref<10x28x120xbf16, #tpu.memory_space<vmem>>, vector<1x28x120xbf16>
    %67 = vector.shape_cast %66 : vector<1x28x120xbf16> to vector<28x120xbf16>
    %cst_54 = arith.constant dense<0.000000e+00> : vector<12x120xf32>
    %68 = tpu.matmul %65, %67, %cst_54 {dimension_numbers = #tpu.dot_dimension_numbers<[1], [0], [0], [1], [0, 0, 1, 1], [], []>} : vector<12x28xbf16>, vector<28x120xbf16>, vector<12x120xf32> -> vector<12x120xf32>
    %c5_55 = arith.constant 5 : index
    %c0_56 = arith.constant 0 : index
    %c0_57 = arith.constant 0 : index
    %69 = vector.load %arg3[%c5_55, %c0_56, %c0_57] : memref<10x28x120xbf16, #tpu.memory_space<vmem>>, vector<1x28x120xbf16>
    %70 = vector.shape_cast %69 : vector<1x28x120xbf16> to vector<28x120xbf16>
    %cst_58 = arith.constant dense<0.000000e+00> : vector<12x120xf32>
    %71 = tpu.matmul %65, %70, %cst_58 {dimension_numbers = #tpu.dot_dimension_numbers<[1], [0], [0], [1], [0, 0, 1, 1], [], []>} : vector<12x28xbf16>, vector<28x120xbf16>, vector<12x120xf32> -> vector<12x120xf32>
    %c0_59 = arith.constant 0 : index
    %c1_60 = arith.constant 1 : index
    %c0_61 = arith.constant 0 : index
    %72 = vector.load %arg1[%c0_59, %c1_60, %c0_61] : memref<1x14x28xf32, #tpu.memory_space<vmem>>, vector<1x12x28xf32>
    %73 = vector.shape_cast %72 : vector<1x12x28xf32> to vector<12x28xf32>
    %74 = arith.truncf %73 : vector<12x28xf32> to vector<12x28xbf16>
    %c1_62 = arith.constant 1 : index
    %c0_63 = arith.constant 0 : index
    %c0_64 = arith.constant 0 : index
    %75 = vector.load %arg3[%c1_62, %c0_63, %c0_64] : memref<10x28x120xbf16, #tpu.memory_space<vmem>>, vector<1x28x120xbf16>
    %76 = vector.shape_cast %75 : vector<1x28x120xbf16> to vector<28x120xbf16>
    %cst_65 = arith.constant dense<0.000000e+00> : vector<12x120xf32>
    %77 = tpu.matmul %74, %76, %cst_65 {dimension_numbers = #tpu.dot_dimension_numbers<[1], [0], [0], [1], [0, 0, 1, 1], [], []>} : vector<12x28xbf16>, vector<28x120xbf16>, vector<12x120xf32> -> vector<12x120xf32>
    %78 = arith.addf %68, %77 : vector<12x120xf32>
    %c6_66 = arith.constant 6 : index
    %c0_67 = arith.constant 0 : index
    %c0_68 = arith.constant 0 : index
    %79 = vector.load %arg3[%c6_66, %c0_67, %c0_68] : memref<10x28x120xbf16, #tpu.memory_space<vmem>>, vector<1x28x120xbf16>
    %80 = vector.shape_cast %79 : vector<1x28x120xbf16> to vector<28x120xbf16>
    %cst_69 = arith.constant dense<0.000000e+00> : vector<12x120xf32>
    %81 = tpu.matmul %74, %80, %cst_69 {dimension_numbers = #tpu.dot_dimension_numbers<[1], [0], [0], [1], [0, 0, 1, 1], [], []>} : vector<12x28xbf16>, vector<28x120xbf16>, vector<12x120xf32> -> vector<12x120xf32>
    %82 = arith.addf %71, %81 : vector<12x120xf32>
    %c0_70 = arith.constant 0 : index
    %c1_71 = arith.constant 1 : index
    %c0_72 = arith.constant 0 : index
    %83 = vector.load %arg2[%c0_70, %c1_71, %c0_72] : memref<1x14x28xf32, #tpu.memory_space<vmem>>, vector<1x12x28xf32>
    %84 = vector.shape_cast %83 : vector<1x12x28xf32> to vector<12x28xf32>
    %85 = arith.truncf %84 : vector<12x28xf32> to vector<12x28xbf16>
    %c2_73 = arith.constant 2 : index
    %c0_74 = arith.constant 0 : index
    %c0_75 = arith.constant 0 : index
    %86 = vector.load %arg3[%c2_73, %c0_74, %c0_75] : memref<10x28x120xbf16, #tpu.memory_space<vmem>>, vector<1x28x120xbf16>
    %87 = vector.shape_cast %86 : vector<1x28x120xbf16> to vector<28x120xbf16>
    %cst_76 = arith.constant dense<0.000000e+00> : vector<12x120xf32>
    %88 = tpu.matmul %85, %87, %cst_76 {dimension_numbers = #tpu.dot_dimension_numbers<[1], [0], [0], [1], [0, 0, 1, 1], [], []>} : vector<12x28xbf16>, vector<28x120xbf16>, vector<12x120xf32> -> vector<12x120xf32>
    %89 = arith.addf %78, %88 : vector<12x120xf32>
    %c7_77 = arith.constant 7 : index
    %c0_78 = arith.constant 0 : index
    %c0_79 = arith.constant 0 : index
    %90 = vector.load %arg3[%c7_77, %c0_78, %c0_79] : memref<10x28x120xbf16, #tpu.memory_space<vmem>>, vector<1x28x120xbf16>
    %91 = vector.shape_cast %90 : vector<1x28x120xbf16> to vector<28x120xbf16>
    %cst_80 = arith.constant dense<0.000000e+00> : vector<12x120xf32>
    %92 = tpu.matmul %85, %91, %cst_80 {dimension_numbers = #tpu.dot_dimension_numbers<[1], [0], [0], [1], [0, 0, 1, 1], [], []>} : vector<12x28xbf16>, vector<28x120xbf16>, vector<12x120xf32> -> vector<12x120xf32>
    %93 = arith.addf %82, %92 : vector<12x120xf32>
    %c0_81 = arith.constant 0 : index
    %c2_82 = arith.constant 2 : index
    %c0_83 = arith.constant 0 : index
    %94 = vector.load %arg1[%c0_81, %c2_82, %c0_83] : memref<1x14x28xf32, #tpu.memory_space<vmem>>, vector<1x12x28xf32>
    %95 = vector.shape_cast %94 : vector<1x12x28xf32> to vector<12x28xf32>
    %96 = arith.truncf %95 : vector<12x28xf32> to vector<12x28xbf16>
    %c3_84 = arith.constant 3 : index
    %c0_85 = arith.constant 0 : index
    %c0_86 = arith.constant 0 : index
    %97 = vector.load %arg3[%c3_84, %c0_85, %c0_86] : memref<10x28x120xbf16, #tpu.memory_space<vmem>>, vector<1x28x120xbf16>
    %98 = vector.shape_cast %97 : vector<1x28x120xbf16> to vector<28x120xbf16>
    %cst_87 = arith.constant dense<0.000000e+00> : vector<12x120xf32>
    %99 = tpu.matmul %96, %98, %cst_87 {dimension_numbers = #tpu.dot_dimension_numbers<[1], [0], [0], [1], [0, 0, 1, 1], [], []>} : vector<12x28xbf16>, vector<28x120xbf16>, vector<12x120xf32> -> vector<12x120xf32>
    %100 = arith.addf %89, %99 : vector<12x120xf32>
    %c8_88 = arith.constant 8 : index
    %c0_89 = arith.constant 0 : index
    %c0_90 = arith.constant 0 : index
    %101 = vector.load %arg3[%c8_88, %c0_89, %c0_90] : memref<10x28x120xbf16, #tpu.memory_space<vmem>>, vector<1x28x120xbf16>
    %102 = vector.shape_cast %101 : vector<1x28x120xbf16> to vector<28x120xbf16>
    %cst_91 = arith.constant dense<0.000000e+00> : vector<12x120xf32>
    %103 = tpu.matmul %96, %102, %cst_91 {dimension_numbers = #tpu.dot_dimension_numbers<[1], [0], [0], [1], [0, 0, 1, 1], [], []>} : vector<12x28xbf16>, vector<28x120xbf16>, vector<12x120xf32> -> vector<12x120xf32>
    %104 = arith.addf %93, %103 : vector<12x120xf32>
    %c0_92 = arith.constant 0 : index
    %c2_93 = arith.constant 2 : index
    %c0_94 = arith.constant 0 : index
    %105 = vector.load %arg2[%c0_92, %c2_93, %c0_94] : memref<1x14x28xf32, #tpu.memory_space<vmem>>, vector<1x12x28xf32>
    %106 = vector.shape_cast %105 : vector<1x12x28xf32> to vector<12x28xf32>
    %107 = arith.truncf %106 : vector<12x28xf32> to vector<12x28xbf16>
    %c4_95 = arith.constant 4 : index
    %c0_96 = arith.constant 0 : index
    %c0_97 = arith.constant 0 : index
    %108 = vector.load %arg3[%c4_95, %c0_96, %c0_97] : memref<10x28x120xbf16, #tpu.memory_space<vmem>>, vector<1x28x120xbf16>
    %109 = vector.shape_cast %108 : vector<1x28x120xbf16> to vector<28x120xbf16>
    %cst_98 = arith.constant dense<0.000000e+00> : vector<12x120xf32>
    %110 = tpu.matmul %107, %109, %cst_98 {dimension_numbers = #tpu.dot_dimension_numbers<[1], [0], [0], [1], [0, 0, 1, 1], [], []>} : vector<12x28xbf16>, vector<28x120xbf16>, vector<12x120xf32> -> vector<12x120xf32>
    %111 = arith.addf %100, %110 : vector<12x120xf32>
    %c9_99 = arith.constant 9 : index
    %c0_100 = arith.constant 0 : index
    %c0_101 = arith.constant 0 : index
    %112 = vector.load %arg3[%c9_99, %c0_100, %c0_101] : memref<10x28x120xbf16, #tpu.memory_space<vmem>>, vector<1x28x120xbf16>
    %113 = vector.shape_cast %112 : vector<1x28x120xbf16> to vector<28x120xbf16>
    %cst_102 = arith.constant dense<0.000000e+00> : vector<12x120xf32>
    %114 = tpu.matmul %107, %113, %cst_102 {dimension_numbers = #tpu.dot_dimension_numbers<[1], [0], [0], [1], [0, 0, 1, 1], [], []>} : vector<12x28xbf16>, vector<28x120xbf16>, vector<12x120xf32> -> vector<12x120xf32>
    %115 = arith.addf %104, %114 : vector<12x120xf32>
    %116 = vector.broadcast %0 : vector<1x120xf32> to vector<12x120xf32>
    %117 = arith.addf %111, %116 : vector<12x120xf32>
    %cst_103 = arith.constant 0.000000e+00 : f32
    %118 = vector.broadcast %cst_103 : f32 to vector<12x120xf32>
    %119 = arith.maximumf %117, %118 : vector<12x120xf32>
    %120 = arith.maximumf %62, %119 : vector<12x120xf32>
    %121 = vector.broadcast %0 : vector<1x120xf32> to vector<12x120xf32>
    %122 = arith.addf %115, %121 : vector<12x120xf32>
    %cst_104 = arith.constant 0.000000e+00 : f32
    %123 = vector.broadcast %cst_104 : f32 to vector<12x120xf32>
    %124 = arith.maximumf %122, %123 : vector<12x120xf32>
    %125 = arith.maximumf %120, %124 : vector<12x120xf32>
    %c0_105 = arith.constant 0 : index
    %c0_106 = arith.constant 0 : index
    %c0_107 = arith.constant 0 : index
    %126 = vector.load %arg5[%c0_105, %c0_106, %c0_107] : memref<1x12x120xf32, #tpu.memory_space<vmem>>, vector<1x12x120xf32>
    %127 = vector.shape_cast %126 : vector<1x12x120xf32> to vector<12x120xf32>
    %128 = vector.shape_cast %125 : vector<12x120xf32> to vector<1x12x120xf32>
    tpu.vector_store %arg5[%c0_105, %c0_106, %c0_107], %128 {strides = array<i32>} : memref<1x12x120xf32, #tpu.memory_space<vmem>>, vector<1x12x120xf32>,
    return
  }
  func.func @transform_0(%arg0: i32) -> (i32, i32, i32) {
    %c0_i32 = arith.constant 0 : i32
    %c0_i32_0 = arith.constant 0 : i32
    %c0_i32_1 = arith.constant 0 : i32
    return %arg0, %c0_i32, %c0_i32_0 : i32, i32, i32
  }
  func.func @transform_1(%arg0: i32) -> (i32, i32, i32) {
    %c0_i32 = arith.constant 0 : i32
    %c0_i32_0 = arith.constant 0 : i32
    %c0_i32_1 = arith.constant 0 : i32
    return %arg0, %c0_i32, %c0_i32_0 : i32, i32, i32
  }
  func.func @transform_2(%arg0: i32) -> (i32, i32, i32) {
    %c0_i32 = arith.constant 0 : i32
    %c0_i32_0 = arith.constant 0 : i32
    %c0_i32_1 = arith.constant 0 : i32
    %c0_i32_2 = arith.constant 0 : i32
    return %c0_i32, %c0_i32_0, %c0_i32_1 : i32, i32, i32
  }
  func.func @transform_3(%arg0: i32) -> (i32, i32) {
    %c0_i32 = arith.constant 0 : i32
    %c0_i32_0 = arith.constant 0 : i32
    %c0_i32_1 = arith.constant 0 : i32
    return %c0_i32, %c0_i32_0 : i32, i32
  }
  func.func @transform_4(%arg0: i32) -> (i32, i32, i32) {
    %c0_i32 = arith.constant 0 : i32
    %c0_i32_0 = arith.constant 0 : i32
    %c0_i32_1 = arith.constant 0 : i32
    return %arg0, %c0_i32, %c0_i32_0 : i32, i32, i32
  }
}

module attributes {stable_mosaic.version = 11 : i64} {
  func.func @_forest_kernel(%arg0: i32, %arg1: memref<2x320xf32, #tpu.memory_space<vmem>>, %arg2: memref<320x128xbf16, #tpu.memory_space<vmem>>, %arg3: memref<1x128xf32, #tpu.memory_space<vmem>>, %arg4: memref<128x32xbf16, #tpu.memory_space<vmem>>, %arg5: memref<1x32xf32, #tpu.memory_space<vmem>>, %arg6: memref<32x128xf32, #tpu.memory_space<vmem>>, %arg7: memref<1x128xf32, #tpu.memory_space<vmem>>, %arg8: memref<32x10xf32, #tpu.memory_space<vmem>>, %arg9: memref<2x10xf32, #tpu.memory_space<vmem>>) attributes {dimension_semantics = [#tpu.dimension_semantics<parallel>], iteration_bounds = array<i64: 1>, scalar_prefetch = 0 : i64, scratch_operands = 0 : i64, tpu.core_type = #tpu.core_type<tc>, window_params = [{transform_indices = @transform_0, window_bounds = array<i64: 2, 320>}, {pipeline_mode = #tpu.pipeline_mode<synchronous>, transform_indices = @transform_1, window_bounds = array<i64: 320, 128>}, {pipeline_mode = #tpu.pipeline_mode<synchronous>, transform_indices = @transform_2, window_bounds = array<i64: 1, 128>}, {pipeline_mode = #tpu.pipeline_mode<synchronous>, transform_indices = @transform_3, window_bounds = array<i64: 128, 32>}, {pipeline_mode = #tpu.pipeline_mode<synchronous>, transform_indices = @transform_4, window_bounds = array<i64: 1, 32>}, {pipeline_mode = #tpu.pipeline_mode<synchronous>, transform_indices = @transform_5, window_bounds = array<i64: 32, 128>}, {pipeline_mode = #tpu.pipeline_mode<synchronous>, transform_indices = @transform_6, window_bounds = array<i64: 1, 128>}, {pipeline_mode = #tpu.pipeline_mode<synchronous>, transform_indices = @transform_7, window_bounds = array<i64: 32, 10>}, {transform_indices = @transform_8, window_bounds = array<i64: 2, 10>}]} {
    %c0 = arith.constant 0 : index
    %c0_0 = arith.constant 0 : index
    %0 = vector.load %arg1[%c0, %c0_0] : memref<2x320xf32, #tpu.memory_space<vmem>>, vector<2x320xf32>
    %1 = arith.truncf %0 : vector<2x320xf32> to vector<2x320xbf16>
    %c0_1 = arith.constant 0 : index
    %c0_2 = arith.constant 0 : index
    %2 = vector.load %arg2[%c0_1, %c0_2] : memref<320x128xbf16, #tpu.memory_space<vmem>>, vector<320x128xbf16>
    %cst = arith.constant dense<0.000000e+00> : vector<2x128xf32>
    %3 = tpu.matmul %1, %2, %cst {dimension_numbers = #tpu.dot_dimension_numbers<[1], [0], [0], [1], [0, 0, 1, 1], [], []>} : vector<2x320xbf16>, vector<320x128xbf16>, vector<2x128xf32> -> vector<2x128xf32>
    %c0_3 = arith.constant 0 : index
    %c0_4 = arith.constant 0 : index
    %4 = vector.load %arg3[%c0_3, %c0_4] : memref<1x128xf32, #tpu.memory_space<vmem>>, vector<1x128xf32>
    %5 = vector.broadcast %4 : vector<1x128xf32> to vector<2x128xf32>
    %6 = arith.addf %3, %5 : vector<2x128xf32>
    %cst_5 = arith.constant 0.000000e+00 : f32
    %7 = vector.broadcast %cst_5 : f32 to vector<2x128xf32>
    %8 = arith.maximumf %6, %7 : vector<2x128xf32>
    %9 = arith.truncf %8 : vector<2x128xf32> to vector<2x128xbf16>
    %c0_6 = arith.constant 0 : index
    %c0_7 = arith.constant 0 : index
    %10 = vector.load %arg4[%c0_6, %c0_7] : memref<128x32xbf16, #tpu.memory_space<vmem>>, vector<128x32xbf16>
    %cst_8 = arith.constant dense<0.000000e+00> : vector<2x32xf32>
    %11 = tpu.matmul %9, %10, %cst_8 {dimension_numbers = #tpu.dot_dimension_numbers<[1], [0], [0], [1], [0, 0, 1, 1], [], []>} : vector<2x128xbf16>, vector<128x32xbf16>, vector<2x32xf32> -> vector<2x32xf32>
    %c0_9 = arith.constant 0 : index
    %c0_10 = arith.constant 0 : index
    %12 = vector.load %arg5[%c0_9, %c0_10] : memref<1x32xf32, #tpu.memory_space<vmem>>, vector<1x32xf32>
    %13 = vector.broadcast %12 : vector<1x32xf32> to vector<2x32xf32>
    %14 = arith.addf %11, %13 : vector<2x32xf32>
    %cst_11 = arith.constant 0.000000e+00 : f32
    %15 = vector.broadcast %cst_11 : f32 to vector<2x32xf32>
    %16 = arith.subf %15, %14 : vector<2x32xf32>
    %17 = math.exp %16 : vector<2x32xf32>
    %cst_12 = arith.constant 1.000000e+00 : f32
    %18 = vector.broadcast %cst_12 : f32 to vector<2x32xf32>
    %19 = arith.addf %18, %17 : vector<2x32xf32>
    %cst_13 = arith.constant 1.000000e+00 : f32
    %20 = vector.broadcast %cst_13 : f32 to vector<2x32xf32>
    %21 = arith.divf %20, %19 : vector<2x32xf32>
    %c0_14 = arith.constant 0 : index
    %c0_15 = arith.constant 0 : index
    %22 = vector.load %arg6[%c0_14, %c0_15] : memref<32x128xf32, #tpu.memory_space<vmem>>, vector<32x128xf32>
    %cst_16 = arith.constant dense<0.000000e+00> : vector<2x128xf32>
    %23 = tpu.matmul %21, %22, %cst_16 {dimension_numbers = #tpu.dot_dimension_numbers<[1], [0], [0], [1], [0, 0, 1, 1], [], []>} : vector<2x32xf32>, vector<32x128xf32>, vector<2x128xf32> -> vector<2x128xf32>
    %c0_17 = arith.constant 0 : index
    %c0_18 = arith.constant 0 : index
    %24 = vector.load %arg7[%c0_17, %c0_18] : memref<1x128xf32, #tpu.memory_space<vmem>>, vector<1x128xf32>
    %25 = vector.broadcast %24 : vector<1x128xf32> to vector<2x128xf32>
    %26 = arith.addf %23, %25 : vector<2x128xf32>
    %27 = vector.extract_strided_slice %26 {offsets = [0, 0], sizes = [2, 32], strides = [1, 1]} : vector<2x128xf32> to vector<2x32xf32>
    %28 = vector.extract_strided_slice %26 {offsets = [0, 32], sizes = [2, 32], strides = [1, 1]} : vector<2x128xf32> to vector<2x32xf32>
    %29 = arith.mulf %27, %28 : vector<2x32xf32>
    %30 = vector.extract_strided_slice %26 {offsets = [0, 64], sizes = [2, 32], strides = [1, 1]} : vector<2x128xf32> to vector<2x32xf32>
    %31 = arith.mulf %29, %30 : vector<2x32xf32>
    %32 = vector.extract_strided_slice %26 {offsets = [0, 96], sizes = [2, 32], strides = [1, 1]} : vector<2x128xf32> to vector<2x32xf32>
    %33 = arith.mulf %31, %32 : vector<2x32xf32>
    %c0_19 = arith.constant 0 : index
    %c0_20 = arith.constant 0 : index
    %34 = vector.load %arg8[%c0_19, %c0_20] : memref<32x10xf32, #tpu.memory_space<vmem>>, vector<32x10xf32>
    %cst_21 = arith.constant dense<0.000000e+00> : vector<2x10xf32>
    %35 = tpu.matmul %33, %34, %cst_21 {dimension_numbers = #tpu.dot_dimension_numbers<[1], [0], [0], [1], [0, 0, 1, 1], [], []>} : vector<2x32xf32>, vector<32x10xf32>, vector<2x10xf32> -> vector<2x10xf32>
    %36 = math.log %35 : vector<2x10xf32>
    %c0_22 = arith.constant 0 : index
    %c0_23 = arith.constant 0 : index
    %37 = vector.load %arg9[%c0_22, %c0_23] : memref<2x10xf32, #tpu.memory_space<vmem>>, vector<2x10xf32>
    tpu.vector_store %arg9[%c0_22, %c0_23], %36 {strides = array<i32>} : memref<2x10xf32, #tpu.memory_space<vmem>>, vector<2x10xf32>,
    return
  }
  func.func @transform_0(%arg0: i32) -> (i32, i32) {
    %c0_i32 = arith.constant 0 : i32
    %c0_i32_0 = arith.constant 0 : i32
    return %arg0, %c0_i32 : i32, i32
  }
  func.func @transform_1(%arg0: i32) -> (i32, i32) {
    %c0_i32 = arith.constant 0 : i32
    %c0_i32_0 = arith.constant 0 : i32
    %c0_i32_1 = arith.constant 0 : i32
    return %c0_i32, %c0_i32_0 : i32, i32
  }
  func.func @transform_2(%arg0: i32) -> (i32, i32) {
    %c0_i32 = arith.constant 0 : i32
    %c0_i32_0 = arith.constant 0 : i32
    %c0_i32_1 = arith.constant 0 : i32
    return %c0_i32, %c0_i32_0 : i32, i32
  }
  func.func @transform_3(%arg0: i32) -> (i32, i32) {
    %c0_i32 = arith.constant 0 : i32
    %c0_i32_0 = arith.constant 0 : i32
    %c0_i32_1 = arith.constant 0 : i32
    return %c0_i32, %c0_i32_0 : i32, i32
  }
  func.func @transform_4(%arg0: i32) -> (i32, i32) {
    %c0_i32 = arith.constant 0 : i32
    %c0_i32_0 = arith.constant 0 : i32
    %c0_i32_1 = arith.constant 0 : i32
    return %c0_i32, %c0_i32_0 : i32, i32
  }
  func.func @transform_5(%arg0: i32) -> (i32, i32) {
    %c0_i32 = arith.constant 0 : i32
    %c0_i32_0 = arith.constant 0 : i32
    %c0_i32_1 = arith.constant 0 : i32
    return %c0_i32, %c0_i32_0 : i32, i32
  }
  func.func @transform_6(%arg0: i32) -> (i32, i32) {
    %c0_i32 = arith.constant 0 : i32
    %c0_i32_0 = arith.constant 0 : i32
    %c0_i32_1 = arith.constant 0 : i32
    return %c0_i32, %c0_i32_0 : i32, i32
  }
  func.func @transform_7(%arg0: i32) -> (i32, i32) {
    %c0_i32 = arith.constant 0 : i32
    %c0_i32_0 = arith.constant 0 : i32
    %c0_i32_1 = arith.constant 0 : i32
    return %c0_i32, %c0_i32_0 : i32, i32
  }
  func.func @transform_8(%arg0: i32) -> (i32, i32) {
    %c0_i32 = arith.constant 0 : i32
    %c0_i32_0 = arith.constant 0 : i32
    return %arg0, %c0_i32 : i32, i32
  }
}

</mosaic_0001>

<bundles_post_ra>
// kernel: ndf_forward.3
= control target key start
LH: loop header
LB: loop body
LE: loop exit
PB: predicated region body
PF: predicated region fallthrough
CT: control target
= control target key end

     0   :  { %9 = vsyncpa [#allocation3], 0  ;;  %s1310_s0 = inlined_call_operand.vmem [shape: f32[2,14,28], index: 0, kind: input, shape index: {}]   ;;  %s1311_s1 = inlined_call_operand.vmem [shape: f32[2,14,28], index: 1, kind: input, shape index: {}]   ;;  %s1312_s2 = inlined_call_operand.hbm [shape: bf16[10,28,120], index: 2, kind: input, shape index: {}]   ;;  %s1313_s3 = inlined_call_operand.hbm [shape: f32[1,120], index: 3, kind: input, shape index: {}]   ;;  %s1314_s4 = inlined_call_operand.vmem [shape: f32[2,12,120], index: 4, kind: output, shape index: {}]  }
   0x1   :  { %10 = vsyncpa [#allocation5], 0  ;;  %s1178_s15 = smov 0  }
   0x2 LB: > { %s152_s18 = sshll.u32 %s1312_s2, 4  ;;  %s901_s19 = sadd.s32 4294967295, %s1147_s15   ;;  %s1147_s15 = sphi %s1178_s15, %s16_s15   ;;  %s153_s18 = int_to_ptr.hbm [resolvable:$true] %s152_s18 }
   0x3   : > { %p903_p0 = scmp.ge.s32.totalorder %s1147_s15, 1  ;;  %p141_p1 = scmp.lt.s32.totalorder %s1147_s15, 3 }
   0x4   : > { %p1056_p2 = scmp.eq.s32.totalorder %s901_s19, 0  ;;  %s1149_s21 = smov [#allocation2]  }
   0x5   : > { %p1189_p3 = pnand %p903_p0, %p141_p1  ;;  %s154_s22 = sshll.u32 %s1149_s21, 4  ;;  %s155_s22 = int_to_ptr.vmem [resolvable:$true] %s154_s22 }
   0x6   : > { %s167_s25 = sshll.u32 %s1313_s3, 4  ;;  %s1150_s26 = smov [#allocation4]   ;;  %s168_s25 = int_to_ptr.hbm [resolvable:$true] %s167_s25 }
   0x7   : > { %p1049_p4 = pneg %p1189_p3  ;;  %s169_s27 = sshll.u32 %s1150_s26, 4  ;;  %s170_s27 = int_to_ptr.vmem [resolvable:$true] %s169_s27 }
   0x8   : > { %s1151_s28 = smov 64   ;;  %s1152_s29 = smov 4  }
   0x9   : > { %p1050_p5 = pnand %p1056_p2, %p1049_p4  ;;  %198 = sbr.rel (%p1189_p3) target bundleno = 245 (0xf5), region = 36 }
   0xb   : > { %1052 = dma.hbm_to_vmem [thread:$0]  (!%p1050_p5), %s153_s18, 2560, %s155_s22, [#allocation3], %s1151_s28, %s1151_s28, %s1152_s29  }
   0xc   : > { %1055 = dma.hbm_to_vmem [thread:$0]  (!%p1050_p5), %s168_s25, 16, %s170_s27, [#allocation5]  }
   0xe   : > { %1138 = dma.done.wait (%p1056_p2), [#allocation3], 2560  }
   0xf   : > { %1140 = vsyncadd (%p1056_p2), [#allocation3], 4294964736 }
  0x10   : > { %1142 = dma.done.wait (%p1056_p2), [#allocation5], 16  }
  0x11   : > { %1144 = vsyncadd (%p1056_p2), [#allocation5], 4294967280  ;;  %p235_p6 = scmp.lt.s32.totalorder %s901_s19, 1  ;;  %vm287_vm0 = vcmask 1045504   ;;  %v922_v0 = vld [vmem:[#allocation2 + $0x18] sm:$0xf] }
  0x12   : > { %v1026_v1 = vld [vmem:[#allocation2 + $0x18] sm:$0x30]  ;;  %v931_v2 = vld [vmem:[#allocation2 + $0x8] sm:$0xf]  ;;  %v1022_v4 = vld [vmem:[#allocation2 + $0x8] sm:$0x30] }
  0x13   : > { %s1317_s19 = smov (!%p235_p6, %s901_s19), 1  ;;  %v923_v3 = vor.u32 %v1026_v1, %v922_v0  ;;  %v940_v5 = vld [vmem:[#allocation2 + $0x68] sm:$0xf]  ;;  %v1028_v6 = vld [vmem:[#allocation2 + $0x68] sm:$0x30]  ;;  %v932_v7 = vor.u32 %v1022_v4, %v931_v2  ;;  %v1220_v13 = vld [vmem:[#allocation2 + $0x10] sm:$0xff] }
  0x14   : > { %s1205_s30 = sshll.u32 %s1317_s19, 4  ;;  %v941_v8 = vor.u32 %v1028_v6, %v940_v5  ;;  %v949_v9 = vld [vmem:[#allocation2 + $0x58] sm:$0xf]  ;;  %v1024_v10 = vld [vmem:[#allocation2 + $0x58] sm:$0x30]  ;;  %v1222_v14 = vld [vmem:[#allocation2] sm:$0xff] }
  0x15   : > { %s1211_s7 = scalar_lea.vmem %s1311_s1, %s1205_s30  ;;  %s1217_s10 = scalar_lea.vmem %s1310_s0, %s1205_s30  ;;  %v289_v11 = vsel %vm287_vm0, %v923_v3, 0  ;;  %v950_v12 = vor.u32 %v1024_v10, %v949_v9  ;;  %v1224_v15 = vld [vmem:[#allocation2 + $0x60] sm:$0xff]  ;;  %v320_v16 = vsel %vm287_vm0, %v932_v7, 0  ;;  %v1230_v18 = vld [vmem:[#allocation2 + $0x50] sm:$0xff]  ;;  %v976_v24 = vld [vmem:[#allocation2 + $0x38] sm:$0xf] }
  0x16   : > { %297 = vmatpush.bf16.msra.mxu0 %v289_v11  ;;  %v1228_v17 = vsel %vm287_vm0, %v941_v8, 0  ;;  %v264_v19 = vld [vmem:[%s1211_s7] sm:$0xff]  ;;  %v265_v20 = vld [vmem:[%s1211_s7 + $0x8] sm:$0xf]  ;;  %328 = vmatpush.bf16.msra.mxu1 %v320_v16  ;;  %v1034_v25 = vld [vmem:[#allocation2 + $0x38] sm:$0x30]  ;;  %s249_s13 = scalar_lea.vmem %s1314_s4, %s1205_s30 }
  0x17   : > { %361 = vmatpush.bf16.msra.mxu2 %v1228_v17  ;;  %v1236_v21 = vsel %vm287_vm0, %v950_v12, 0  ;;  %v252_v22 = vld [vmem:[%s1217_s10] sm:$0xff]  ;;  %v253_v23 = vld [vmem:[%s1217_s10 + $0x8] sm:$0xf]  ;;  %v1036_v27 = vld [vmem:[#allocation2 + $0x88] sm:$0x30]  ;;  %v1241_v28 = vpack.c.bf16 %v265_v20, %v264_v19  ;;  %v977_v29 = vor.u32 %v1034_v25, %v976_v24 }
  0x18   : > { %389 = vmatpush.bf16.msra.mxu3 %v1236_v21  ;;  %v985_v26 = vld [vmem:[#allocation2 + $0x88] sm:$0xf]  ;;  %v1030_v32 = vld [vmem:[#allocation2 + $0x28] sm:$0x30]  ;;  %v967_v33 = vld [vmem:[#allocation2 + $0x78] sm:$0xf]  ;;  %v254_v34 = vpack.c.bf16 %v253_v23, %v252_v22 }
  0x19   : > { %v986_v30 = vor.u32 %v1036_v27, %v985_v26  ;;  %v958_v31 = vld [vmem:[#allocation2 + $0x28] sm:$0xf]  ;;  %vm283_vm1 = vcmask 228352   ;;  %v1032_v36 = vld [vmem:[#allocation2 + $0x78] sm:$0x30]  ;;  %v1247_v37 = vsel %vm287_vm0, %v977_v29, 0 }
  0x1a   : > { %298 = vmatpush.bf16.msra.mxu0 %v1220_v13  ;;  %v959_v35 = vor.u32 %v1030_v32, %v958_v31  ;;  %329 = vmatpush.bf16.msra.mxu1 %v1222_v14  ;;  %v968_v39 = vor.u32 %v1032_v36, %v967_v33  ;;  %v1255_v41 = vld [vmem:[#allocation2 + $0x30] sm:$0xff]  ;;  %v994_v42 = vld [vmem:[#allocation2 + $0x48] sm:$0xf]  ;;  %v1035_v44 = vld [vmem:[#allocation2 + $0x80] sm:$0xff]  ;;  %vm808_vm2 = vcmask 982016   ;;  %vm810_vm3 = vcmask 977920  }
  0x1b   : > { %362 = vmatpush.bf16.msra.mxu2 %v1224_v15  ;;  %v1250_v38 = vsel %vm287_vm0, %v986_v30, 0  ;;  %v1038_v45 = vld [vmem:[#allocation2 + $0x48] sm:$0x30]  ;;  %v1003_v46 = vld [vmem:[#allocation2 + $0x98] sm:$0xf]  ;;  %v1029_v49 = vld [vmem:[#allocation2 + $0x20] sm:$0xff] }
  0x1c   : > { %390 = vmatpush.bf16.msra.mxu3 %v1230_v18  ;;  %v420_v40 = vsel %vm287_vm0, %v959_v35, 0  ;;  %v455_v43 = vsel %vm287_vm0, %v968_v39, 0  ;;  %v995_v47 = vor.u32 %v1038_v45, %v994_v42  ;;  %v1040_v48 = vld [vmem:[#allocation2 + $0x98] sm:$0x30]  ;;  %v1031_v51 = vld [vmem:[#allocation2 + $0x70] sm:$0xff]  ;;  %v1037_v54 = vld [vmem:[#allocation2 + $0x40] sm:$0xff] }
  0x1d   : > { %924 = vmatmul.msk.bf16.vlgmr.msra.gmra.mxu0 %vm283_vm1, %v1241_v28  ;;  %933 = vmatmul.msk.bf16.vlgmr.msra.gmra.mxu1 %vm283_vm1, %v254_v34  ;;  %v1004_v50 = vor.u32 %v1040_v48, %v1003_v46  ;;  %v1039_v55 = vld [vmem:[#allocation2 + $0x90] sm:$0xff]  ;;  %v397_v56 = vld [vmem:[%s1217_s10 + $0x1] sm:$0xff]  ;;  %v398_v57 = vld [vmem:[%s1217_s10 + $0x9] sm:$0xf] }
  0x1e   : > { %942 = vmatmul.msk.bf16.vlgmr.msra.gmra.mxu2 %vm283_vm1, %v1241_v28  ;;  %428 = vmatpush.bf16.msrb.mxu0 %v420_v40  ;;  %v572_v52 = vsel %vm287_vm0, %v995_v47, 0  ;;  %v473_v58 = vld [vmem:[%s1211_s7 + $0x1] sm:$0xff]  ;;  %v474_v59 = vld [vmem:[%s1211_s7 + $0x9] sm:$0xf]  ;;  %v399_v60 = vpack.c.bf16 %v398_v57, %v397_v56 }
  0x1f   : > { %504 = vmatpush.bf16.msrb.mxu2 %v1247_v37  ;;  %951 = vmatmul.msk.bf16.vlgmr.msra.gmra.mxu3 %vm283_vm1, %v254_v34  ;;  %v607_v53 = vsel %vm287_vm0, %v1004_v50, 0  ;;  %v475_v61 = vpack.c.bf16 %v474_v59, %v473_v58  ;;  %v549_v62 = vld [vmem:[%s1217_s10 + $0x2] sm:$0xff]  ;;  %v550_v63 = vld [vmem:[%s1217_s10 + $0xa] sm:$0xf] }
  0x20   : > { %539 = vmatpush.bf16.msrb.mxu3 %v1250_v38  ;;  %463 = vmatpush.bf16.msrb.mxu1 %v455_v43  ;;  %v551_v0 = vpack.c.bf16 %v550_v63, %v549_v62  ;;  %v758_v1 = vld [vmem:[%s1211_s7 + $0x2] sm:$0xff]  ;;  %v759_v2 = vld [vmem:[%s1211_s7 + $0xa] sm:$0xf] }
  0x21   : > { %v760_v3 = vpack.c.bf16 %v759_v2, %v758_v1 }
  0x22   : > { %429 = vmatpush.bf16.msrb.mxu0 %v1029_v49 }
  0x23   : > { %505 = vmatpush.bf16.msrb.mxu2 %v1255_v41 }
  0x24   : > { %540 = vmatpush.bf16.msrb.mxu3 %v1035_v44  ;;  %464 = vmatpush.bf16.msrb.mxu1 %v1031_v51 }
  0x26   : > { %580 = vmatpush.bf16.msra.mxu0 %v572_v52 }
  0x27   : > { %644 = vmatpush.bf16.msra.mxu2 %v289_v11 }
  0x28   : > { %658 = vmatpush.bf16.msra.mxu3 %v320_v16  ;;  %615 = vmatpush.bf16.msra.mxu1 %v607_v53 }
  0x2a   : > { %581 = vmatpush.bf16.msra.mxu0 %v1037_v54 }
  0x2b   : > { %645 = vmatpush.bf16.msra.mxu2 %v1220_v13 }
  0x2c   : > { %659 = vmatpush.bf16.msra.mxu3 %v1222_v14  ;;  %616 = vmatpush.bf16.msra.mxu1 %v1039_v55 }
  0x2d   : > { %960 = vmatmul.msk.bf16.vlgmr.msrb.gmra.mxu0 %vm283_vm1, %v399_v60  ;;  %969 = vmatmul.msk.bf16.vlgmr.msrb.gmra.mxu1 %vm283_vm1, %v399_v60 }
  0x2e   : > { %978 = vmatmul.msk.bf16.vlgmr.msrb.gmra.mxu2 %vm283_vm1, %v475_v61  ;;  %672 = vmatpush.bf16.msrb.mxu0 %v1228_v17 }
  0x2f   : > { %987 = vmatmul.msk.bf16.vlgmr.msrb.gmra.mxu3 %vm283_vm1, %v475_v61  ;;  %700 = vmatpush.bf16.msrb.mxu2 %v420_v40 }
  0x30   : > { %716 = vmatpush.bf16.msrb.mxu3 %v455_v43  ;;  %686 = vmatpush.bf16.msrb.mxu1 %v1236_v21 }
  0x32   : > { %673 = vmatpush.bf16.msrb.mxu0 %v1224_v15 }
  0x33   : > { %701 = vmatpush.bf16.msrb.mxu2 %v1029_v49 }
  0x34   : > { %717 = vmatpush.bf16.msrb.mxu3 %v1031_v51  ;;  %687 = vmatpush.bf16.msrb.mxu1 %v1230_v18 }
  0x3d   : > { %996 = vmatmul.msk.bf16.vlgmr.msra.gmra.mxu0 %vm283_vm1, %v551_v0  ;;  %1005 = vmatmul.msk.bf16.vlgmr.msra.gmra.mxu1 %vm283_vm1, %v551_v0 }
  0x3e   : > { %1006 = vmatmul.msk.bf16.vlgmr.msra.gmra.mxu2 %vm283_vm1, %v399_v60  ;;  %732 = vmatpush.bf16.msra.mxu0 %v1247_v37 }
  0x3f   : > { %1007 = vmatmul.msk.bf16.vlgmr.msra.gmra.mxu3 %vm283_vm1, %v1241_v28  ;;  %770 = vmatpush.bf16.msra.mxu2 %v572_v52 }
  0x40   : > { %786 = vmatpush.bf16.msra.mxu3 %v607_v53  ;;  %748 = vmatpush.bf16.msra.mxu1 %v1250_v38 }
  0x42   : > { %733 = vmatpush.bf16.msra.mxu0 %v1255_v41  ;;  %v1072_v41 = vld [vmem:[#allocation4] ss:$0 sm:$0xff] }
  0x43   : > { %771 = vmatpush.bf16.msra.mxu2 %v1037_v54 }
  0x44   : > { %787 = vmatpush.bf16.msra.mxu3 %v1039_v55  ;;  %749 = vmatpush.bf16.msra.mxu1 %v1035_v44 }
  0x4d   : > { %1008 = vmatmul.msk.bf16.vlgmr.msrb.gmra.mxu0 %vm283_vm1, %v399_v60  ;;  %1009 = vmatmul.msk.bf16.vlgmr.msrb.gmra.mxu1 %vm283_vm1, %v1241_v28 }
  0x4e   : > { %1010 = vmatmul.msk.bf16.vlgmr.msrb.gmra.mxu2 %vm283_vm1, %v475_v61 }
  0x4f   : > { %1011 = vmatmul.msk.bf16.vlgmr.msrb.gmra.mxu3 %vm283_vm1, %v475_v61 }
  0x5d   : > { %1012 = vmatmul.msk.bf16.vlgmr.msra.gmra.mxu0 %vm283_vm1, %v551_v0  ;;  %1013 = vmatmul.msk.bf16.vlgmr.msra.gmra.mxu1 %vm283_vm1, %v551_v0 }
  0x5e   : > { %1014 = vmatmul.msk.bf16.vlgmr.msra.gmra.mxu2 %vm283_vm1, %v760_v3 }
  0x5f   : > { %1015 = vmatmul.msk.bf16.vlgmr.msra.gmra.mxu3 %vm283_vm1, %v760_v3 }
  0x9a   : > { %v300_v4 = vpop.f32.mrf.mxu0  ;;  %v331_v5 = vpop.f32.mrf.mxu1 }
  0x9b   : > { %v332_v33 = vadd.f32 %v331_v5, %v300_v4 }
  0xa1   : > { %v364_v6 = vpop.f32.mrf.mxu2 }
  0xa2   : > { %v392_v7 = vpop.f32.mrf.mxu3  ;;  %v302_v8 = vpop.f32.mrf.mxu0 }
  0xa3   : > { %v333_v9 = vpop.f32.mrf.mxu1  ;;  %v393_v34 = vadd.f32 %v392_v7, %v364_v6 }
  0xa4   : > { %v334_v47 = vadd.f32 %v333_v9, %v302_v8 }
  0xa9   : > { %v366_v10 = vpop.f32.mrf.mxu2 }
  0xaa   : > { %v394_v11 = vpop.f32.mrf.mxu3  ;;  %v431_v12 = vpop.f32.mrf.mxu0 }
  0xab   : > { %v466_v13 = vpop.f32.mrf.mxu1  ;;  %v436_v36 = vadd.f32 %v431_v12, %v332_v33  ;;  %v395_v48 = vadd.f32 %v394_v11, %v366_v10 }
  0xac   : > { %v471_v37 = vadd.f32 %v466_v13, %v393_v34 }
  0xb1   : > { %v507_v14 = vpop.f32.mrf.mxu2 }
  0xb2   : > { %v542_v15 = vpop.f32.mrf.mxu3  ;;  %v433_v16 = vpop.f32.mrf.mxu0  ;;  %v512_v38 = vadd.f32 %v507_v14, %v436_v36 }
  0xb3   : > { %v468_v17 = vpop.f32.mrf.mxu1  ;;  %v547_v39 = vadd.f32 %v542_v15, %v471_v37  ;;  %v437_v53 = vadd.f32 %v433_v16, %v334_v47 }
  0xb4   : > { %v472_v54 = vadd.f32 %v468_v17, %v395_v48 }
  0xb9   : > { %v509_v18 = vpop.f32.mrf.mxu2 }
  0xba   : > { %v544_v19 = vpop.f32.mrf.mxu3  ;;  %v583_v20 = vpop.f32.mrf.mxu0  ;;  %v513_v57 = vadd.f32 %v509_v18, %v437_v53 }
  0xbb   : > { %v618_v21 = vpop.f32.mrf.mxu1  ;;  %v588_v40 = vadd.f32 %v583_v20, %v512_v38  ;;  %v548_v58 = vadd.f32 %v544_v19, %v472_v54 }
  0xbc   : > { %v623_v42 = vadd.f32 %v618_v21, %v547_v39 }
  0xbd   : > { %v628_v51 = vadd.f32 %v1072_v41, %v588_v40 }
  0xbe   : > { %v632_v52 = vadd.f32 %v1072_v41, %v623_v42 }
  0xbf   : > { %v630_v60 = vmax.f32 %v628_v51, 0.0 }
  0xc0   : > { %v634_v61 = vmax.f32 %v632_v52, 0.0 }
  0xc1   : > { %v647_v22 = vpop.f32.mrf.mxu2 }
  0xc2   : > { %v661_v23 = vpop.f32.mrf.mxu3  ;;  %v585_v24 = vpop.f32.mrf.mxu0  ;;  %v636_v7 = vmax.f32 %v630_v60, %v634_v61 }
  0xc3   : > { %v620_v25 = vpop.f32.mrf.mxu1  ;;  %v662_v49 = vadd.f32 %v661_v23, %v647_v22  ;;  %v589_v0 = vadd.f32 %v585_v24, %v513_v57 }
  0xc4   : > { %v624_v1 = vadd.f32 %v620_v25, %v548_v58 }
  0xc5   : > { %v629_v11 = vadd.f32 %v1072_v41, %v589_v0 }
  0xc6   : > { %v633_v12 = vadd.f32 %v1072_v41, %v624_v1 }
  0xc7   : > { %v631_v22 = vmax.f32 %v629_v11, 0.0 }
  0xc8   : > { %v635_v23 = vmax.f32 %v633_v12, 0.0 }
  0xc9   : > { %v649_v26 = vpop.f32.mrf.mxu2 }
  0xca   : > { %v663_v27 = vpop.f32.mrf.mxu3  ;;  %v675_v28 = vpop.f32.mrf.mxu0 }
  0xcb   : > { %v689_v29 = vpop.f32.mrf.mxu1  ;;  %v664_v5 = vadd.f32 %v663_v27, %v649_v26 }
  0xcc   : > { %v690_v45 = vadd.f32 %v689_v29, %v675_v28 }
  0xd1   : > { %v703_v30 = vpop.f32.mrf.mxu2 }
  0xd2   : > { %v719_v31 = vpop.f32.mrf.mxu3  ;;  %v677_v32 = vpop.f32.mrf.mxu0  ;;  %v708_v55 = vadd.f32 %v703_v30, %v662_v49  ;;  %v637_v30 = vmax.f32 %v631_v22, %v635_v23 }
  0xd3   : > { %v691_v35 = vpop.f32.mrf.mxu1  ;;  %v724_v56 = vadd.f32 %v719_v31, %v690_v45 }
  0xd4   : > { %v692_v8 = vadd.f32 %v691_v35, %v677_v32 }
  0xd9   : > { %v705_v43 = vpop.f32.mrf.mxu2 }
  0xda   : > { %v721_v44 = vpop.f32.mrf.mxu3  ;;  %v735_v46 = vpop.f32.mrf.mxu0  ;;  %v709_v13 = vadd.f32 %v705_v43, %v664_v5 }
  0xdb   : > { %v751_v50 = vpop.f32.mrf.mxu1  ;;  %v740_v59 = vadd.f32 %v735_v46, %v708_v55  ;;  %v725_v16 = vadd.f32 %v721_v44, %v692_v8 }
  0xdc   : > { %v756_v62 = vadd.f32 %v751_v50, %v724_v56 }
  0xe1   : > { %v773_v63 = vpop.f32.mrf.mxu2 }
  0xe2   : > { %v778_v2 = vadd.f32 %v773_v63, %v740_v59  ;;  %v789_v3 = vpop.f32.mrf.mxu3  ;;  %v737_v10 = vpop.f32.mrf.mxu0 }
  0xe3   : > { %v794_v4 = vadd.f32 %v789_v3, %v756_v62  ;;  %v753_v15 = vpop.f32.mrf.mxu1  ;;  %v741_v19 = vadd.f32 %v737_v10, %v709_v13 }
  0xe4   : > { %v796_v6 = vadd.f32 %v1072_v41, %v778_v2  ;;  %v757_v20 = vadd.f32 %v753_v15, %v725_v16 }
  0xe5   : > { %v802_v9 = vadd.f32 %v1072_v41, %v794_v4 }
  0xe6   : > { %v798_v14 = vmax.f32 %v796_v6, 0.0 }
  0xe7   : > { %v804_v18 = vmax.f32 %v802_v9, 0.0 }
  0xe8   : > { %v800_v17 = vmax.f32 %v636_v7, %v798_v14 }
  0xe9   : > { %v775_v21 = vpop.f32.mrf.mxu2 }
  0xea   : > { %v806_v24 = vmax.f32 %v800_v17, %v804_v18  ;;  %v779_v25 = vadd.f32 %v775_v21, %v741_v19  ;;  %v791_v26 = vpop.f32.mrf.mxu3 }
  0xeb   : > { %v795_v27 = vadd.f32 %v791_v26, %v757_v20 }
  0xec   : > { %809 = vst.msk [vmem:[%s249_s13] sm:$0xff] %vm808_vm2, %v806_v24  ;;  %v797_v28 = vadd.f32 %v1072_v41, %v779_v25 }
  0xed   : > { %v803_v29 = vadd.f32 %v1072_v41, %v795_v27 }
  0xee   : > { %v799_v31 = vmax.f32 %v797_v28, 0.0 }
  0xef   : > { %v805_v33 = vmax.f32 %v803_v29, 0.0 }
  0xf0   : > { %v801_v32 = vmax.f32 %v637_v30, %v799_v31 }
  0xf2   : > { %v807_v34 = vmax.f32 %v801_v32, %v805_v33 }
  0xf4   : > { %811 = vst.msk [vmem:[%s249_s13 + $0x8] sm:$0xf] %vm810_vm3, %v807_v34 }
  0xf5 PF: > { %s16_s15 = sadd.s32 1, %s1147_s15  }
  0xf6   : > { %p13_p7 = scmp.ge.s32.totalorder %s16_s15, 4  }
  0xf8   :  { %15 = sbr.rel (!%p13_p7) target bundleno = 2 (0x2), region = 87 }
  0xfd   :  { %833 = vsyncpa [#allocation3], 1 }
  0xfe   :  { %835 = vsyncpa [#allocation3 + $0x1], 1 }
  0xff   :  { %836 = vsyncpa [#allocation5], 1 }

// kernel: ndf_forward.4
= control target key start
LH: loop header
LB: loop body
LE: loop exit
PB: predicated region body
PF: predicated region fallthrough
CT: control target
= control target key end

     0   :  { %s1792_s15 = smov 0   ;;  %s2447_s0 = inlined_call_operand.vmem [shape: f32[2,6,120], index: 0, kind: input, shape index: {}]   ;;  %s2448_s1 = inlined_call_operand.vmem [shape: f32[2,6,120], index: 1, kind: input, shape index: {}]   ;;  %s2449_s2 = inlined_call_operand.vmem [shape: bf16[10,120,80], index: 2, kind: input, shape index: {}]   ;;  %s2450_s3 = inlined_call_operand.vmem [shape: f32[1,80], index: 3, kind: input, shape index: {}]   ;;  %s2451_s4 = inlined_call_operand.vmem [shape: f32[2,4,80], index: 4, kind: output, shape index: {}]  }
   0x1 LB: > { %s1235_s16 = sadd.s32 4294967295, %s1765_s15   ;;  %p1239_p0 = scmp.ge.s32.totalorder %s1765_s15, 1  ;;  %s1765_s15 = sphi %s1792_s15, %s14_s15  }
   0x2   : > { %p170_p1 = scmp.lt.s32.totalorder %s1765_s15, 3 }
   0x4   : > { %p171_p2 = pnand %p1239_p0, %p170_p1 }
   0x6   : > { %174 = sbr.rel (%p171_p2) target bundleno = 320 (0x140), region = 36 }
   0xb   : > { %v1272_v0 = vld [vmem:[%s2449_s2 + $0x74] sm:$0xf]  ;;  %v227_v1 = vld [vmem:[%s2449_s2 + $0x38] sm:$0xf]  ;;  %v1345_v4 = vld [vmem:[%s2449_s2 + $0x1a0] sm:$0xf] }
   0xc   : > { %v291_v2 = vunpack.c.l.b16 %v1272_v0  ;;  %v357_v3 = vunpack.c.l.b16 %v227_v1  ;;  %v1257_v5 = vld [vmem:[%s2449_s2 + $0x164] sm:$0xf]  ;;  %vm311_vm0 = vcmask 1043456   ;;  %v437_v6 = vunpack.c.l.b16 %v1345_v4  ;;  %v1829_v16 = vld [vmem:[%s2449_s2 + $0x6c] sm:$0xff]  ;;  %v1841_v18 = vld [vmem:[%s2449_s2 + $0x198] sm:$0xff]  ;;  %p198_p3 = scmp.lt.s32.totalorder %s1235_s16, 1 }
   0xd   : > { %v498_v7 = vunpack.c.l.b16 %v1257_v5  ;;  %v1834_v17 = vld [vmem:[%s2449_s2 + $0x30] sm:$0xff]  ;;  %v1846_v19 = vld [vmem:[%s2449_s2 + $0x15c] sm:$0xff]  ;;  %v1853_v20 = vld [vmem:[%s2449_s2 + $0x64] sm:$0xff]  ;;  %vm307_vm1 = vcmask 982016   ;;  %vm1168_vm2 = vcmask 650240  }
   0xe   : > { %v299_v8 = vpack.c.b16 %v291_v2, %v291_v2  ;;  %v365_v9 = vpack.c.b16 %v357_v3, %v357_v3  ;;  %v445_v10 = vpack.c.b16 %v437_v6, %v437_v6  ;;  %v1858_v21 = vld [vmem:[%s2449_s2 + $0x28] sm:$0xff]  ;;  %v1865_v22 = vld [vmem:[%s2449_s2 + $0x190] sm:$0xff]  ;;  %v1877_v24 = vld [vmem:[%s2449_s2 + $0x5c] sm:$0xff]  ;;  %s2483_s16 = smov (!%p198_p3, %s1235_s16), 1 }
   0xf   : > { %v506_v11 = vpack.c.b16 %v498_v7, %v498_v7  ;;  %v1870_v23 = vld [vmem:[%s2449_s2 + $0x154] sm:$0xff]  ;;  %v1882_v25 = vld [vmem:[%s2449_s2 + $0x20] sm:$0xff]  ;;  %v1889_v26 = vld [vmem:[%s2449_s2 + $0x188] sm:$0xff]  ;;  %s1240_s25 = sshll.u32 %s2483_s16, 3  ;;  %s1242_s24 = sshll.u32 %s2483_s16, 2 }
  0x10   : > { %v1813_v12 = vsel %vm311_vm0, %v299_v8, 0  ;;  %v1816_v13 = vsel %vm311_vm0, %v365_v9, 0  ;;  %v1821_v14 = vsel %vm311_vm0, %v445_v10, 0  ;;  %v1894_v27 = vld [vmem:[%s2449_s2 + $0x14c] sm:$0xff]  ;;  %v1903_v28 = vld [vmem:[%s2449_s2 + $0x54] sm:$0xff]  ;;  %v1915_v30 = vld [vmem:[%s2449_s2 + $0x180] sm:$0xff]  ;;  %s1990_s10 = scalar_lea.vmem %s2448_s1, %s1240_s25  ;;  %s1995_s13 = scalar_lea.vmem %s2447_s0, %s1240_s25 }
  0x11   : > { %315 = vmatpush.bf16.msra.mxu0 %v1813_v12  ;;  %379 = vmatpush.bf16.msra.mxu1 %v1816_v13  ;;  %v1824_v15 = vsel %vm311_vm0, %v506_v11, 0  ;;  %v1908_v29 = vld [vmem:[%s2449_s2 + $0x18] sm:$0xff]  ;;  %v1920_v31 = vld [vmem:[%s2449_s2 + $0x144] sm:$0xff]  ;;  %v1925_v32 = vld [vmem:[%s2449_s2 + $0x4c] sm:$0xff]  ;;  %s209_s27 = scalar_lea.vmem %s2451_s4, %s1242_s24 }
  0x12   : > { %456 = vmatpush.bf16.msra.mxu2 %v1821_v14  ;;  %517 = vmatpush.bf16.msra.mxu3 %v1824_v15  ;;  %v1930_v33 = vld [vmem:[%s2449_s2 + $0x10] sm:$0xff]  ;;  %v1941_v34 = vld [vmem:[%s2449_s2 + $0x178] sm:$0xff]  ;;  %v1506_v38 = vld [vmem:[%s2449_s2 + $0xec] sm:$0xf] }
  0x13   : > { %v1418_v35 = vld [vmem:[%s2449_s2 + $0xb0] sm:$0xf]  ;;  %v1462_v36 = vld [vmem:[%s2449_s2 + $0x1dc] sm:$0xf]  ;;  %v1550_v39 = vld [vmem:[%s2449_s2 + $0x218] sm:$0xf]  ;;  %v738_v44 = vunpack.c.l.b16 %v1506_v38 }
  0x14   : > { %v1954_v37 = vld [vmem:[%s2449_s2 + $0x13c] sm:$0xff]  ;;  %v577_v40 = vunpack.c.l.b16 %v1418_v35  ;;  %v658_v41 = vunpack.c.l.b16 %v1462_v36  ;;  %v1968_v42 = vld [vmem:[%s2449_s2 + $0x44] sm:$0xff]  ;;  %v819_v45 = vunpack.c.l.b16 %v1550_v39  ;;  %v1980_v46 = vld [vmem:[%s2449_s2 + $0x170] sm:$0xff] }
  0x15   : > { %316 = vmatpush.bf16.msra.mxu0 %v1829_v16  ;;  %380 = vmatpush.bf16.msra.mxu1 %v1834_v17  ;;  %v1973_v43 = vld [vmem:[%s2449_s2 + $0x8] sm:$0xff]  ;;  %v1985_v47 = vld [vmem:[%s2449_s2 + $0x134] sm:$0xff]  ;;  %v2002_v50 = vld [vmem:[%s2449_s2 + $0x3c] sm:$0xff]  ;;  %v746_v53 = vpack.c.b16 %v738_v44, %v738_v44 }
  0x16   : > { %457 = vmatpush.bf16.msra.mxu2 %v1841_v18  ;;  %518 = vmatpush.bf16.msra.mxu3 %v1846_v19  ;;  %v585_v48 = vpack.c.b16 %v577_v40, %v577_v40  ;;  %v666_v49 = vpack.c.b16 %v658_v41, %v658_v41  ;;  %v2007_v51 = vld [vmem:[%s2449_s2] sm:$0xff]  ;;  %v2012_v52 = vld [vmem:[%s2449_s2 + $0x168] sm:$0xff]  ;;  %v827_v54 = vpack.c.b16 %v819_v45, %v819_v45  ;;  %v2051_v1 = vld [vmem:[%s2449_s2 + $0x1d4] sm:$0xff] }
  0x17   : > { %v2019_v55 = vld [vmem:[%s2449_s2 + $0x12c] sm:$0xff]  ;;  %v244_v56 = vld [vmem:[%s1990_s10] sm:$0xf]  ;;  %v2032_v60 = vsel %vm311_vm0, %v746_v53, 0  ;;  %v2058_v2 = vld [vmem:[%s2449_s2 + $0xe4] sm:$0xff] }
  0x18   : > { %v211_v57 = vld [vmem:[%s1995_s13] sm:$0xf]  ;;  %v2024_v58 = vsel %vm311_vm0, %v585_v48, 0  ;;  %v2027_v59 = vsel %vm311_vm0, %v666_v49, 0  ;;  %v2035_v61 = vsel %vm311_vm0, %v827_v54, 0  ;;  %v2037_v62 = vpack.c.bf16 %v244_v56, %v244_v56  ;;  %v2046_v0 = vld [vmem:[%s2449_s2 + $0xa8] sm:$0xff] }
  0x19   : > { %317 = vmatpush.bf16.msra.mxu0 %v1853_v20  ;;  %381 = vmatpush.bf16.msra.mxu1 %v1858_v21  ;;  %v212_v63 = vpack.c.bf16 %v211_v57, %v211_v57  ;;  %v2063_v3 = vld [vmem:[%s2449_s2 + $0x210] sm:$0xff]  ;;  %v2076_v4 = vld [vmem:[%s2449_s2 + $0xa0] sm:$0xff]  ;;  %v2093_v7 = vld [vmem:[%s2449_s2 + $0x208] sm:$0xff] }
  0x1a   : > { %458 = vmatpush.bf16.msra.mxu2 %v1865_v22  ;;  %519 = vmatpush.bf16.msra.mxu3 %v1870_v23  ;;  %v2081_v5 = vld [vmem:[%s2449_s2 + $0x1cc] sm:$0xff]  ;;  %v2088_v6 = vld [vmem:[%s2449_s2 + $0xdc] sm:$0xff]  ;;  %2462 = vst [vmem:[#allocation2_spill] sm:$0xff] %v2093_v7  ;;  %v2105_v9 = vld [vmem:[%s2449_s2 + $0x1c4] sm:$0xff] }
  0x1b   : > { %v2100_v8 = vld [vmem:[%s2449_s2 + $0x98] sm:$0xff]  ;;  %v2117_v11 = vld [vmem:[%s2449_s2 + $0x200] sm:$0xff]  ;;  %v2124_v35 = vld [vmem:[%s2449_s2 + $0x90] sm:$0xff] }
  0x1c   : > { %v2112_v10 = vld [vmem:[%s2449_s2 + $0xd4] sm:$0xff]  ;;  %2464 = vst [vmem:[#allocation4_spill] sm:$0xff] %v2117_v11  ;;  %v2129_v36 = vld [vmem:[%s2449_s2 + $0x1bc] sm:$0xff]  ;;  %v2136_v38 = vld [vmem:[%s2449_s2 + $0xcc] sm:$0xff] }
  0x1d   : > { %318 = vmatpush.bf16.msra.mxu0 %v1877_v24  ;;  %382 = vmatpush.bf16.msra.mxu1 %v1882_v25  ;;  %2463 = vst [vmem:[#allocation3_spill] sm:$0xff] %v2112_v10  ;;  %v2141_v39 = vld [vmem:[%s2449_s2 + $0x1f8] sm:$0xff]  ;;  %v2146_v40 = vld [vmem:[%s2449_s2 + $0x88] sm:$0xff]  ;;  %v1638_v45 = vld [vmem:[%s2449_s2 + $0x254] sm:$0xf] }
  0x1e   : > { %459 = vmatpush.bf16.msra.mxu2 %v1889_v26  ;;  %520 = vmatpush.bf16.msra.mxu3 %v1894_v27  ;;  %2465 = vst [vmem:[#allocation5_spill] sm:$0xff] %v2136_v38  ;;  %v2153_v41 = vld [vmem:[%s2449_s2 + $0x1b4] sm:$0xff]  ;;  %v1594_v44 = vld [vmem:[%s2449_s2 + $0x128] sm:$0xf]  ;;  %v980_v54 = vunpack.c.l.b16 %v1638_v45  ;;  %v2178_v56 = vld [vmem:[%s2449_s2 + $0x80] sm:$0xff] }
  0x1f   : > { %2466 = vst [vmem:[#allocation6_spill] sm:$0xff] %v2141_v39  ;;  %v2166_v48 = vld [vmem:[%s2449_s2 + $0xc4] sm:$0xff]  ;;  %v2171_v49 = vld [vmem:[%s2449_s2 + $0x1f0] sm:$0xff]  ;;  %v899_v53 = vunpack.c.l.b16 %v1594_v44 }
  0x20   : > { %2467 = vst [vmem:[#allocation7_spill] sm:$0xff] %v2166_v48  ;;  %v2183_v57 = vld [vmem:[%s2449_s2 + $0x1ac] sm:$0xff] }
  0x21   : > { %319 = vmatpush.bf16.msra.mxu0 %v1903_v28  ;;  %383 = vmatpush.bf16.msra.mxu1 %v1908_v29  ;;  %2468 = vst [vmem:[#allocation8_spill] sm:$0xff] %v2171_v49  ;;  %v2195_v44 = vld [vmem:[%s2449_s2 + $0x1e8] sm:$0xff]  ;;  %v907_v45 = vpack.c.b16 %v899_v53, %v899_v53  ;;  %v2214_v53 = vld [vmem:[%s2449_s2 + $0xb4] sm:$0xff] }
  0x22   : > { %460 = vmatpush.bf16.msra.mxu2 %v1915_v30  ;;  %521 = vmatpush.bf16.msra.mxu3 %v1920_v31  ;;  %2470 = vst [vmem:[#allocation10_spill] sm:$0xff] %v2195_v44 }
  0x25   : > { %320 = vmatpush.bf16.msra.mxu0 %v1925_v32  ;;  %384 = vmatpush.bf16.msra.mxu1 %v1930_v33 }
  0x26   : > { %461 = vmatpush.bf16.msra.mxu2 %v1941_v34  ;;  %522 = vmatpush.bf16.msra.mxu3 %v1954_v37 }
  0x29   : > { %321 = vmatpush.bf16.msra.mxu0 %v1968_v42  ;;  %385 = vmatpush.bf16.msra.mxu1 %v1973_v43 }
  0x2a   : > { %462 = vmatpush.bf16.msra.mxu2 %v1980_v46  ;;  %523 = vmatpush.bf16.msra.mxu3 %v1985_v47 }
  0x2d   : > { %322 = vmatpush.bf16.msra.mxu0 %v2002_v50  ;;  %386 = vmatpush.bf16.msra.mxu1 %v2007_v51 }
  0x2e   : > { %463 = vmatpush.bf16.msra.mxu2 %v2012_v52  ;;  %524 = vmatpush.bf16.msra.mxu3 %v2019_v55 }
  0x30   : > { %1301 = vmatmul.msk.bf16.vlgmr.msra.gmra.mxu0 %vm307_vm1, %v2037_v62  ;;  %1330 = vmatmul.msk.bf16.vlgmr.msra.gmra.mxu1 %vm307_vm1, %v212_v63 }
  0x31   : > { %599 = vmatpush.bf16.msrb.mxu0 %v2024_v58  ;;  %677 = vmatpush.bf16.msrb.mxu1 %v2027_v59 }
  0x32   : > { %760 = vmatpush.bf16.msrb.mxu2 %v2032_v60  ;;  %838 = vmatpush.bf16.msrb.mxu3 %v2035_v61 }
  0x33   : > { %1374 = vmatmul.msk.bf16.vlgmr.msra.gmra.mxu2 %vm307_vm1, %v2037_v62  ;;  %1403 = vmatmul.msk.bf16.vlgmr.msra.gmra.mxu3 %vm307_vm1, %v212_v63  ;;  %v2190_v63 = vld [vmem:[%s2449_s2 + $0xbc] sm:$0xff] }
  0x34   : > { %2469 = vst [vmem:[#allocation9_spill] sm:$0xff] %v2190_v63 }
  0x35   : > { %600 = vmatpush.bf16.msrb.mxu0 %v2046_v0  ;;  %678 = vmatpush.bf16.msrb.mxu1 %v2051_v1 }
  0x36   : > { %761 = vmatpush.bf16.msrb.mxu2 %v2058_v2  ;;  %839 = vmatpush.bf16.msrb.mxu3 %v2063_v3 }
  0x39   : > { %601 = vmatpush.bf16.msrb.mxu0 %v2076_v4  ;;  %679 = vmatpush.bf16.msrb.mxu1 %v2081_v5 }
  0x3a   : > { %762 = vmatpush.bf16.msrb.mxu2 %v2088_v6  ;;  %840 = vmatpush.bf16.msrb.mxu3 %v2093_v7 }
  0x3d   : > { %602 = vmatpush.bf16.msrb.mxu0 %v2100_v8  ;;  %680 = vmatpush.bf16.msrb.mxu1 %v2105_v9 }
  0x3e   : > { %763 = vmatpush.bf16.msrb.mxu2 %v2112_v10  ;;  %841 = vmatpush.bf16.msrb.mxu3 %v2117_v11  ;;  %v530_v11 = vld [vmem:[%s1995_s13 + $0x1] sm:$0xf]  ;;  %v2224_v10 = vsel %vm311_vm0, %v907_v45, 0 }
  0x3f   : > { %v2283_v45 = vld [vmem:[%s2449_s2 + $0x23c] sm:$0xff] }
  0x41   : > { %603 = vmatpush.bf16.msrb.mxu0 %v2124_v35  ;;  %681 = vmatpush.bf16.msrb.mxu1 %v2129_v36 }
  0x42   : > { %764 = vmatpush.bf16.msrb.mxu2 %v2136_v38  ;;  %842 = vmatpush.bf16.msrb.mxu3 %v2141_v39  ;;  %v988_v39 = vpack.c.b16 %v980_v54, %v980_v54  ;;  %v2219_v54 = vld [vmem:[%s2449_s2 + $0x1e0] sm:$0xff] }
  0x43   : > { %2471 = vst [vmem:[#allocation11_spill] sm:$0xff] %v2219_v54  ;;  %v691_v38 = vld [vmem:[%s1990_s10 + $0x1] sm:$0xf] }
  0x44   : > { %v2227_v7 = vsel %vm311_vm0, %v988_v39, 0  ;;  %v2242_v39 = vld [vmem:[%s2449_s2 + $0x120] sm:$0xff] }
  0x45   : > { %604 = vmatpush.bf16.msrb.mxu0 %v2146_v40  ;;  %682 = vmatpush.bf16.msrb.mxu1 %v2153_v41 }
  0x46   : > { %765 = vmatpush.bf16.msrb.mxu2 %v2166_v48  ;;  %843 = vmatpush.bf16.msrb.mxu3 %v2171_v49  ;;  %v2202_v49 = vld [vmem:[%s2449_s2 + $0x78] sm:$0xff]  ;;  %v2207_v48 = vld [vmem:[%s2449_s2 + $0x1a4] sm:$0xff] }
  0x49   : > { %605 = vmatpush.bf16.msrb.mxu0 %v2178_v56  ;;  %683 = vmatpush.bf16.msrb.mxu1 %v2183_v57 }
  0x4a   : > { %766 = vmatpush.bf16.msrb.mxu2 %v2190_v63  ;;  %844 = vmatpush.bf16.msrb.mxu3 %v2195_v44  ;;  %v2231_v44 = vpack.c.bf16 %v691_v38, %v691_v38  ;;  %v2235_v63 = vpack.c.bf16 %v530_v11, %v530_v11  ;;  %v2247_v38 = vld [vmem:[%s2449_s2 + $0x24c] sm:$0xff] }
  0x4b   : > { %v2278_v11 = vld [vmem:[%s2449_s2 + $0x110] sm:$0xff] }
  0x4d   : > { %606 = vmatpush.bf16.msrb.mxu0 %v2202_v49  ;;  %684 = vmatpush.bf16.msrb.mxu1 %v2207_v48 }
  0x4e   : > { %767 = vmatpush.bf16.msrb.mxu2 %v2214_v53  ;;  %845 = vmatpush.bf16.msrb.mxu3 %v2219_v54  ;;  %v852_v54 = vld [vmem:[%s1995_s13 + $0x2] sm:$0xf] }
  0x50   : > { %1447 = vmatmul.msk.bf16.vlgmr.msrb.gmra.mxu0 %vm307_vm1, %v2235_v63  ;;  %1491 = vmatmul.msk.bf16.vlgmr.msrb.gmra.mxu1 %vm307_vm1, %v2235_v63 }
  0x51   : > { %921 = vmatpush.bf16.msra.mxu0 %v2224_v10  ;;  %999 = vmatpush.bf16.msra.mxu1 %v2227_v7 }
  0x52   : > { %1021 = vmatpush.bf16.msra.mxu2 %v1813_v12  ;;  %1034 = vmatpush.bf16.msra.mxu3 %v1816_v13  ;;  %v2264_v12 = vld [vmem:[%s2449_s2 + $0x118] sm:$0xff]  ;;  %v2269_v13 = vld [vmem:[%s2449_s2 + $0x244] sm:$0xff] }
  0x53   : > { %1535 = vmatmul.msk.bf16.vlgmr.msrb.gmra.mxu2 %vm307_vm1, %v2231_v44  ;;  %1579 = vmatmul.msk.bf16.vlgmr.msrb.gmra.mxu3 %vm307_vm1, %v2231_v44 }
  0x55   : > { %922 = vmatpush.bf16.msra.mxu0 %v2242_v39  ;;  %1000 = vmatpush.bf16.msra.mxu1 %v2247_v38 }
  0x56   : > { %1022 = vmatpush.bf16.msra.mxu2 %v1829_v16  ;;  %1035 = vmatpush.bf16.msra.mxu3 %v1834_v17  ;;  %v2292_v16 = vld [vmem:[%s2449_s2 + $0x108] sm:$0xff]  ;;  %v2297_v17 = vld [vmem:[%s2449_s2 + $0x234] sm:$0xff] }
  0x59   : > { %923 = vmatpush.bf16.msra.mxu0 %v2264_v12  ;;  %1001 = vmatpush.bf16.msra.mxu1 %v2269_v13 }
  0x5a   : > { %1023 = vmatpush.bf16.msra.mxu2 %v1853_v20  ;;  %1036 = vmatpush.bf16.msra.mxu3 %v1858_v21  ;;  %v2306_v20 = vld [vmem:[%s2449_s2 + $0x100] sm:$0xff]  ;;  %v2311_v21 = vld [vmem:[%s2449_s2 + $0x22c] sm:$0xff] }
  0x5d   : > { %924 = vmatpush.bf16.msra.mxu0 %v2278_v11  ;;  %1002 = vmatpush.bf16.msra.mxu1 %v2283_v45 }
  0x5e   : > { %1024 = vmatpush.bf16.msra.mxu2 %v1877_v24  ;;  %1037 = vmatpush.bf16.msra.mxu3 %v1882_v25  ;;  %v2320_v24 = vld [vmem:[%s2449_s2 + $0xf8] sm:$0xff]  ;;  %v2325_v25 = vld [vmem:[%s2449_s2 + $0x224] sm:$0xff] }
  0x61   : > { %925 = vmatpush.bf16.msra.mxu0 %v2292_v16  ;;  %1003 = vmatpush.bf16.msra.mxu1 %v2297_v17 }
  0x62   : > { %1025 = vmatpush.bf16.msra.mxu2 %v1903_v28  ;;  %1038 = vmatpush.bf16.msra.mxu3 %v1908_v29  ;;  %v2334_v28 = vld [vmem:[%s2449_s2 + $0xf0] sm:$0xff]  ;;  %v2339_v29 = vld [vmem:[%s2449_s2 + $0x21c] sm:$0xff] }
  0x65   : > { %926 = vmatpush.bf16.msra.mxu0 %v2306_v20  ;;  %1004 = vmatpush.bf16.msra.mxu1 %v2311_v21 }
  0x66   : > { %1026 = vmatpush.bf16.msra.mxu2 %v1925_v32  ;;  %1039 = vmatpush.bf16.msra.mxu3 %v1930_v33  ;;  %v2344_v32 = vpack.c.bf16 %v852_v54, %v852_v54  ;;  %v2481_v33 = vld [vmem:[#allocation11_spill] sm:$0xff] }
  0x69   : > { %927 = vmatpush.bf16.msra.mxu0 %v2320_v24  ;;  %1005 = vmatpush.bf16.msra.mxu1 %v2325_v25 }
  0x6a   : > { %1027 = vmatpush.bf16.msra.mxu2 %v1968_v42  ;;  %1040 = vmatpush.bf16.msra.mxu3 %v1973_v43 }
  0x6d   : > { %928 = vmatpush.bf16.msra.mxu0 %v2334_v28  ;;  %1006 = vmatpush.bf16.msra.mxu1 %v2339_v29 }
  0x6e   : > { %1028 = vmatpush.bf16.msra.mxu2 %v2002_v50  ;;  %1041 = vmatpush.bf16.msra.mxu3 %v2007_v51 }
  0x70   : > { %1623 = vmatmul.msk.bf16.vlgmr.msra.gmra.mxu0 %vm307_vm1, %v2344_v32  ;;  %1667 = vmatmul.msk.bf16.vlgmr.msra.gmra.mxu1 %vm307_vm1, %v2344_v32 }
  0x71   : > { %1047 = vmatpush.bf16.msrb.mxu0 %v1821_v14  ;;  %1060 = vmatpush.bf16.msrb.mxu1 %v1824_v15  ;;  %v2472_v14 = vld [vmem:[#allocation2_spill] sm:$0xff]  ;;  %v2473_v15 = vld [vmem:[#allocation3_spill] sm:$0xff] }
  0x72   : > { %1073 = vmatpush.bf16.msrb.mxu2 %v2024_v58  ;;  %1087 = vmatpush.bf16.msrb.mxu3 %v2027_v59 }
  0x73   : > { %1668 = vmatmul.msk.bf16.vlgmr.msra.gmra.mxu2 %vm307_vm1, %v2235_v63  ;;  %1669 = vmatmul.msk.bf16.vlgmr.msra.gmra.mxu3 %vm307_vm1, %v2037_v62 }
  0x75   : > { %1048 = vmatpush.bf16.msrb.mxu0 %v1841_v18  ;;  %1061 = vmatpush.bf16.msrb.mxu1 %v1846_v19  ;;  %v2474_v18 = vld [vmem:[#allocation4_spill] sm:$0xff]  ;;  %v2475_v19 = vld [vmem:[#allocation5_spill] sm:$0xff] }
  0x76   : > { %1074 = vmatpush.bf16.msrb.mxu2 %v2046_v0  ;;  %1088 = vmatpush.bf16.msrb.mxu3 %v2051_v1 }
  0x79   : > { %1049 = vmatpush.bf16.msrb.mxu0 %v1865_v22  ;;  %1062 = vmatpush.bf16.msrb.mxu1 %v1870_v23  ;;  %v2476_v22 = vld [vmem:[#allocation6_spill] sm:$0xff]  ;;  %v2477_v23 = vld [vmem:[#allocation7_spill] sm:$0xff] }
  0x7a   : > { %1075 = vmatpush.bf16.msrb.mxu2 %v2076_v4  ;;  %1089 = vmatpush.bf16.msrb.mxu3 %v2081_v5 }
  0x7d   : > { %1050 = vmatpush.bf16.msrb.mxu0 %v1889_v26  ;;  %1063 = vmatpush.bf16.msrb.mxu1 %v1894_v27  ;;  %v2478_v26 = vld [vmem:[#allocation8_spill] sm:$0xff]  ;;  %v2479_v27 = vld [vmem:[#allocation9_spill] sm:$0xff] }
  0x7e   : > { %1076 = vmatpush.bf16.msrb.mxu2 %v2100_v8  ;;  %1090 = vmatpush.bf16.msrb.mxu3 %v2105_v9  ;;  %v1758_v8 = vld [vmem:[%s2450_s3] ss:$0 sm:$0xff] }
  0x81   : > { %1051 = vmatpush.bf16.msrb.mxu0 %v1915_v30  ;;  %1064 = vmatpush.bf16.msrb.mxu1 %v1920_v31  ;;  %v2480_v30 = vld [vmem:[#allocation10_spill] sm:$0xff] }
  0x82   : > { %1077 = vmatpush.bf16.msrb.mxu2 %v2124_v35  ;;  %1091 = vmatpush.bf16.msrb.mxu3 %v2129_v36  ;;  %v1129_v31 = vld [vmem:[%s1990_s10 + $0x2] sm:$0xf] }
  0x85   : > { %1052 = vmatpush.bf16.msrb.mxu0 %v1941_v34  ;;  %1065 = vmatpush.bf16.msrb.mxu1 %v1954_v37  ;;  %v1130_v34 = vpack.c.bf16 %v1129_v31, %v1129_v31 }
  0x86   : > { %1078 = vmatpush.bf16.msrb.mxu2 %v2146_v40  ;;  %1092 = vmatpush.bf16.msrb.mxu3 %v2153_v41 }
  0x89   : > { %1053 = vmatpush.bf16.msrb.mxu0 %v1980_v46  ;;  %1066 = vmatpush.bf16.msrb.mxu1 %v1985_v47 }
  0x8a   : > { %1079 = vmatpush.bf16.msrb.mxu2 %v2178_v56  ;;  %1093 = vmatpush.bf16.msrb.mxu3 %v2183_v57 }
  0x8d   : > { %1054 = vmatpush.bf16.msrb.mxu0 %v2012_v52  ;;  %1067 = vmatpush.bf16.msrb.mxu1 %v2019_v55 }
  0x8e   : > { %1080 = vmatpush.bf16.msrb.mxu2 %v2202_v49  ;;  %1094 = vmatpush.bf16.msrb.mxu3 %v2207_v48 }
  0x90   : > { %1670 = vmatmul.msk.bf16.vlgmr.msrb.gmra.mxu0 %vm307_vm1, %v2235_v63  ;;  %1671 = vmatmul.msk.bf16.vlgmr.msrb.gmra.mxu1 %vm307_vm1, %v2037_v62 }
  0x91   : > { %1101 = vmatpush.bf16.msra.mxu0 %v2032_v60  ;;  %1115 = vmatpush.bf16.msra.mxu1 %v2035_v61 }
  0x92   : > { %1134 = vmatpush.bf16.msra.mxu2 %v2224_v10  ;;  %1148 = vmatpush.bf16.msra.mxu3 %v2227_v7 }
  0x93   : > { %1672 = vmatmul.msk.bf16.vlgmr.msrb.gmra.mxu2 %vm307_vm1, %v2231_v44  ;;  %1673 = vmatmul.msk.bf16.vlgmr.msrb.gmra.mxu3 %vm307_vm1, %v2231_v44 }
  0x95   : > { %1102 = vmatpush.bf16.msra.mxu0 %v2058_v2  ;;  %1116 = vmatpush.bf16.msra.mxu1 %v2063_v3 }
  0x96   : > { %1135 = vmatpush.bf16.msra.mxu2 %v2242_v39  ;;  %1149 = vmatpush.bf16.msra.mxu3 %v2247_v38 }
  0x99   : > { %1103 = vmatpush.bf16.msra.mxu0 %v2088_v6  ;;  %1117 = vmatpush.bf16.msra.mxu1 %v2472_v14 }
  0x9a   : > { %1136 = vmatpush.bf16.msra.mxu2 %v2264_v12  ;;  %1150 = vmatpush.bf16.msra.mxu3 %v2269_v13 }
  0x9d   : > { %1104 = vmatpush.bf16.msra.mxu0 %v2473_v15  ;;  %1118 = vmatpush.bf16.msra.mxu1 %v2474_v18 }
  0x9e   : > { %1137 = vmatpush.bf16.msra.mxu2 %v2278_v11  ;;  %1151 = vmatpush.bf16.msra.mxu3 %v2283_v45 }
  0xa1   : > { %1105 = vmatpush.bf16.msra.mxu0 %v2475_v19  ;;  %1119 = vmatpush.bf16.msra.mxu1 %v2476_v22 }
  0xa2   : > { %1138 = vmatpush.bf16.msra.mxu2 %v2292_v16  ;;  %1152 = vmatpush.bf16.msra.mxu3 %v2297_v17 }
  0xa5   : > { %1106 = vmatpush.bf16.msra.mxu0 %v2477_v23  ;;  %1120 = vmatpush.bf16.msra.mxu1 %v2478_v26 }
  0xa6   : > { %1139 = vmatpush.bf16.msra.mxu2 %v2306_v20  ;;  %1153 = vmatpush.bf16.msra.mxu3 %v2311_v21 }
  0xa9   : > { %1107 = vmatpush.bf16.msra.mxu0 %v2479_v27  ;;  %1121 = vmatpush.bf16.msra.mxu1 %v2480_v30 }
  0xaa   : > { %1140 = vmatpush.bf16.msra.mxu2 %v2320_v24  ;;  %1154 = vmatpush.bf16.msra.mxu3 %v2325_v25 }
  0xad   : > { %1108 = vmatpush.bf16.msra.mxu0 %v2214_v53  ;;  %1122 = vmatpush.bf16.msra.mxu1 %v2481_v33  ;;  %v324_v37 = vpop.f32.mrf.mxu0  ;;  %v388_v42 = vpop.f32.mrf.mxu1 }
  0xae   : > { %1141 = vmatpush.bf16.msra.mxu2 %v2334_v28  ;;  %1155 = vmatpush.bf16.msra.mxu3 %v2339_v29  ;;  %v389_v43 = vadd.f32 %v388_v42, %v324_v37 }
  0xb0   : > { %1674 = vmatmul.msk.bf16.vlgmr.msra.gmra.mxu0 %vm307_vm1, %v2344_v32  ;;  %1675 = vmatmul.msk.bf16.vlgmr.msra.gmra.mxu1 %vm307_vm1, %v2344_v32 }
  0xb1   : > { %1676 = vmatmul.msk.bf16.vlgmr.msra.gmra.mxu2 %vm307_vm1, %v1130_v34  ;;  %1677 = vmatmul.msk.bf16.vlgmr.msra.gmra.mxu3 %vm307_vm1, %v1130_v34 }
  0xb5   : > { %v326_v51 = vpop.f32.mrf.mxu0  ;;  %v390_v52 = vpop.f32.mrf.mxu1 }
  0xb6   : > { %v465_v46 = vpop.f32.mrf.mxu2  ;;  %v526_v47 = vpop.f32.mrf.mxu3 }
  0xb7   : > { %v527_v50 = vadd.f32 %v526_v47, %v465_v46 }
  0xbe   : > { %v467_v55 = vpop.f32.mrf.mxu2  ;;  %v528_v58 = vpop.f32.mrf.mxu3 }
  0xcd   : > { %v608_v59 = vpop.f32.mrf.mxu0  ;;  %v686_v60 = vpop.f32.mrf.mxu1 }
  0xce   : > { %v612_v61 = vadd.f32 %v608_v59, %v389_v43  ;;  %v690_v62 = vadd.f32 %v686_v60, %v527_v50 }
  0xd5   : > { %v610_v4 = vpop.f32.mrf.mxu0  ;;  %v688_v5 = vpop.f32.mrf.mxu1 }
  0xd6   : > { %v769_v0 = vpop.f32.mrf.mxu2  ;;  %v847_v1 = vpop.f32.mrf.mxu3 }
  0xd7   : > { %v773_v2 = vadd.f32 %v769_v0, %v612_v61  ;;  %v851_v3 = vadd.f32 %v847_v1, %v690_v62 }
  0xde   : > { %v771_v6 = vpop.f32.mrf.mxu2  ;;  %v849_v7 = vpop.f32.mrf.mxu3 }
  0xed   : > { %v930_v9 = vpop.f32.mrf.mxu0  ;;  %v1008_v10 = vpop.f32.mrf.mxu1 }
  0xee   : > { %v934_v35 = vadd.f32 %v930_v9, %v773_v2  ;;  %v1012_v36 = vadd.f32 %v1008_v10, %v851_v3 }
  0xf0   : > { %v1016_v40 = vadd.f32 %v1758_v8, %v934_v35  ;;  %v1018_v41 = vadd.f32 %v1758_v8, %v1012_v36 }
  0xf2   : > { %v1017_v48 = vmax.f32 %v1016_v40, 0.0  ;;  %v1019_v49 = vmax.f32 %v1018_v41, 0.0 }
  0xf4   : > { %v1020_v56 = vmax.f32 %v1017_v48, %v1019_v49 }
  0xf5   : > { %v932_v44 = vpop.f32.mrf.mxu0  ;;  %v1010_v53 = vpop.f32.mrf.mxu1 }
  0xf6   : > { %v1030_v57 = vpop.f32.mrf.mxu2  ;;  %v1043_v63 = vpop.f32.mrf.mxu3 }
  0xf7   : > { %v1044_v21 = vadd.f32 %v1043_v63, %v1030_v57 }
  0xfe   : > { %v1032_v54 = vpop.f32.mrf.mxu2  ;;  %v1045_v39 = vpop.f32.mrf.mxu3 }
 0x10d   : > { %v1056_v38 = vpop.f32.mrf.mxu0  ;;  %v1069_v12 = vpop.f32.mrf.mxu1 }
 0x10e   : > { %v1070_v24 = vadd.f32 %v1069_v12, %v1056_v38 }
 0x115   : > { %v1058_v45 = vpop.f32.mrf.mxu0  ;;  %v1071_v16 = vpop.f32.mrf.mxu1 }
 0x116   : > { %v1082_v13 = vpop.f32.mrf.mxu2  ;;  %v1096_v11 = vpop.f32.mrf.mxu3 }
 0x117   : > { %v1086_v29 = vadd.f32 %v1082_v13, %v1044_v21  ;;  %v1100_v32 = vadd.f32 %v1096_v11, %v1070_v24 }
 0x11e   : > { %v1084_v17 = vpop.f32.mrf.mxu2  ;;  %v1098_v20 = vpop.f32.mrf.mxu3 }
 0x12d   : > { %v1110_v25 = vpop.f32.mrf.mxu0  ;;  %v1124_v28 = vpop.f32.mrf.mxu1 }
 0x12e   : > { %v1114_v14 = vadd.f32 %v1110_v25, %v1086_v29  ;;  %v1128_v15 = vadd.f32 %v1124_v28, %v1100_v32 }
 0x134   : > { %v1143_v18 = vpop.f32.mrf.mxu2  ;;  %v1157_v19 = vpop.f32.mrf.mxu3 }
 0x135   : > { %v1147_v22 = vadd.f32 %v1143_v18, %v1114_v14  ;;  %v1161_v23 = vadd.f32 %v1157_v19, %v1128_v15  ;;  %v1112_v26 = vpop.f32.mrf.mxu0  ;;  %v1126_v27 = vpop.f32.mrf.mxu1 }
 0x137   : > { %v1162_v30 = vadd.f32 %v1758_v8, %v1147_v22  ;;  %v1165_v31 = vadd.f32 %v1758_v8, %v1161_v23 }
 0x139   : > { %v1163_v33 = vmax.f32 %v1162_v30, 0.0  ;;  %v1166_v37 = vmax.f32 %v1165_v31, 0.0 }
 0x13b   : > { %v1164_v34 = vmax.f32 %v1020_v56, %v1163_v33 }
 0x13c   : > { %v1145_v42 = vpop.f32.mrf.mxu2  ;;  %v1159_v43 = vpop.f32.mrf.mxu3 }
 0x13d   : > { %v1167_v46 = vmax.f32 %v1164_v34, %v1166_v37 }
 0x13f   : > { %1169 = vst.msk [vmem:[%s209_s27] sm:$0xf] %vm1168_vm2, %v1167_v46 }
 0x140 PF: > { %s14_s15 = sadd.s32 1, %s1765_s15  }
 0x141   : > { %p11_p4 = scmp.ge.s32.totalorder %s14_s15, 4  }
 0x143   :  { %13 = sbr.rel (!%p11_p4) target bundleno = 1 (0x1), region = 78 }

// kernel: ndf_forward.5
= control target key start
LH: loop header
LB: loop body
LE: loop exit
PB: predicated region body
PF: predicated region fallthrough
CT: control target
= control target key end

     0   :  { %s800_s0 = inlined_call_operand.vmem [shape: f32[2,320], index: 0, kind: input, shape index: {}]   ;;  %s801_s1 = inlined_call_operand.vmem [shape: bf16[320,128], index: 1, kind: input, shape index: {}]   ;;  %s802_s2 = inlined_call_operand.vmem [shape: f32[1,128], index: 2, kind: input, shape index: {}]   ;;  %s803_s3 = inlined_call_operand.vmem [shape: bf16[128,32], index: 3, kind: input, shape index: {}]   ;;  %s804_s4 = inlined_call_operand.vmem [shape: f32[1,32], index: 4, kind: input, shape index: {}]   ;;  %s805_s5 = inlined_call_operand.vmem [shape: f32[32,128], index: 5, kind: input, shape index: {}]   ;;  %s806_s6 = inlined_call_operand.vmem [shape: f32[1,128], index: 6, kind: input, shape index: {}]   ;;  %s807_s7 = inlined_call_operand.vmem [shape: f32[32,10], index: 7, kind: input, shape index: {}]   ;;  %s808_s8 = inlined_call_operand.hbm [shape: f32[2,10], index: 8, kind: output, shape index: {}]  }
   0x1   :  { %v566_v0 = vld [vmem:[%s801_s1 + $0x38] sm:$0xff]  ;;  %v565_v3 = vld [vmem:[%s801_s1 + $0x30] sm:$0xff]  ;;  %v31_v6 = vld [vmem:[%s800_s0] sm:$0x3f] }
   0x2   :  { %v574_v1 = vld [vmem:[%s801_s1 + $0x78] sm:$0xff]  ;;  %211 = vmatpush.bf16.msra.mxu0 %v566_v0  ;;  %v573_v4 = vld [vmem:[%s801_s1 + $0x70] sm:$0xff]  ;;  %v564_v7 = vld [vmem:[%s801_s1 + $0x28] sm:$0xff]  ;;  %33 = vst [vmem:[#allocation1] ss:$4 sm:$0xff] %v31_v6 }
   0x3   :  { %v578_v2 = vld [vmem:[%s801_s1 + $0x98] sm:$0xff]  ;;  %224 = vmatpush.bf16.msra.mxu1 %v574_v1  ;;  %v577_v5 = vld [vmem:[%s801_s1 + $0x90] sm:$0xff]  ;;  %v572_v8 = vld [vmem:[%s801_s1 + $0x68] sm:$0xff] }
   0x4   :  { %241 = vmatpush.bf16.msra.mxu2 %v578_v2  ;;  %v576_v9 = vld [vmem:[%s801_s1 + $0x88] sm:$0xff]  ;;  %v586_v10 = vld [vmem:[%s803_s3 + $0x38] sm:$0xff]  ;;  %v585_v11 = vld [vmem:[%s803_s3 + $0x30] sm:$0xff] }
   0x5   :  { %320 = vmatpush.bf16.msra.mxu3 %v586_v10 }
   0x6   :  { %212 = vmatpush.bf16.msra.mxu0 %v565_v3 }
   0x7   :  { %225 = vmatpush.bf16.msra.mxu1 %v573_v4 }
   0x8   :  { %242 = vmatpush.bf16.msra.mxu2 %v577_v5 }
   0x9   :  { %13 = vsyncpa [#allocation3], 0  ;;  %v563_v12 = vld [vmem:[%s801_s1 + $0x20] sm:$0xff]  ;;  %v36_v15 = vld.sshfl [vmem:[#allocation1 + $0x10] sm:$0xff pattern:$0x73625140]  ;;  %321 = vmatpush.bf16.msra.mxu3 %v585_v11 }
   0xa   :  { %213 = vmatpush.bf16.msra.mxu0 %v564_v7  ;;  %v571_v13 = vld [vmem:[%s801_s1 + $0x60] sm:$0xff]  ;;  %v584_v16 = vld [vmem:[%s803_s3 + $0x28] sm:$0xff]  ;;  %v562_v17 = vld [vmem:[%s801_s1 + $0x18] sm:$0xff]  ;;  %v42_v19 = vpack.c.bf16 %v36_v15, %v36_v15  ;;  %vm207_vm0 = vcmask 523264   ;;  %vm360_vm4 = vcmask 261120   ;;  %s626_s26 = smov 32  }
   0xb   :  { %226 = vmatpush.bf16.msra.mxu1 %v572_v8  ;;  %v575_v14 = vld [vmem:[%s801_s1 + $0x80] sm:$0xff]  ;;  %v570_v18 = vld [vmem:[%s801_s1 + $0x58] sm:$0xff]  ;;  %v561_v21 = vld [vmem:[%s801_s1 + $0x10] sm:$0xff]  ;;  %s627_s0 = smov 96   ;;  %s628_s27 = smov 64   ;;  %vm426_vm6 = vcmask 74752  }
   0xc   :  { %243 = vmatpush.bf16.msra.mxu2 %v576_v9  ;;  %v583_v20 = vld [vmem:[%s803_s3 + $0x20] sm:$0xff]  ;;  %v569_v22 = vld [vmem:[%s801_s1 + $0x50] sm:$0xff]  ;;  %v560_v23 = vld [vmem:[%s801_s1 + $0x8] sm:$0xff]  ;;  %s435_s16 = sshll.u32 %s808_s8, 4  ;;  %s436_s16 = int_to_ptr.hbm [resolvable:$true] %s435_s16 }
   0xd   :  { %322 = vmatpush.bf16.msra.mxu3 %v584_v16  ;;  %v568_v24 = vld [vmem:[%s801_s1 + $0x48] sm:$0xff]  ;;  %v559_v25 = vld [vmem:[%s801_s1] sm:$0xff]  ;;  %v582_v31 = vld [vmem:[%s803_s3 + $0x18] sm:$0xff] }
   0xe   :  { %214 = vmatpush.bf16.msra.mxu0 %v563_v12  ;;  %v567_v26 = vld [vmem:[%s801_s1 + $0x40] sm:$0xff]  ;;  %v35_v28 = vld.sshfl [vmem:[#allocation1 + $0x8] sm:$0xff pattern:$0x73625140]  ;;  %v581_v32 = vld [vmem:[%s803_s3 + $0x10] sm:$0xff]  ;;  %s629_s1 = smov [#allocation2]  }
   0xf   :  { %227 = vmatpush.bf16.msra.mxu1 %v571_v13  ;;  %v34_v27 = vld.sshfl [vmem:[#allocation1] sm:$0xff pattern:$0x73625140]  ;;  %v41_v30 = vpack.c.bf16 %v35_v28, %v35_v28  ;;  %v580_v33 = vld [vmem:[%s803_s3 + $0x8] sm:$0xff]  ;;  %v355_v47 = vld [vmem:[%s805_s5 + $0x18] sm:$0xff]  ;;  %s433_s13 = sshll.u32 %s629_s1, 4  ;;  %s434_s13 = int_to_ptr.vmem [resolvable:$true] %s433_s13 }
  0x10   :  { %244 = vmatpush.bf16.msra.mxu2 %v575_v14  ;;  %v40_v29 = vpack.c.bf16 %v34_v27, %v34_v27  ;;  %v579_v34 = vld [vmem:[%s803_s3] sm:$0xff]  ;;  %v354_v48 = vld [vmem:[%s805_s5 + $0x10] sm:$0xff]  ;;  %v353_v49 = vld [vmem:[%s805_s5 + $0x8] sm:$0xff] }
  0x11   :  { %323 = vmatpush.bf16.msra.mxu3 %v583_v20  ;;  %v591_v36 = vld [vmem:[%s802_s2] ss:$0 sm:$0xff]  ;;  %v400_v8 = vld [vmem:[%s807_s7 + $0x18] sm:$0xff]  ;;  %v399_v9 = vld [vmem:[%s807_s7 + $0x10] sm:$0xff] }
  0x12   :  { %215 = vmatpush.bf16.msra.mxu0 %v562_v17  ;;  %v352_v50 = vld [vmem:[%s805_s5] sm:$0xff]  ;;  %v398_v10 = vld [vmem:[%s807_s7 + $0x8] sm:$0xff] }
  0x13   :  { %228 = vmatpush.bf16.msra.mxu1 %v570_v18  ;;  %524 = vmatmul.msk.bf16.vlgmr.msra.gmra.mxu2 %vm207_vm0, %v42_v19  ;;  %v592_v51 = vld [vmem:[%s804_s4] ss:$0 sm:$0xff] }
  0x14   :  { %376 = vmatpush.msrb.mxu2 %v355_v47  ;;  %v593_v5 = vld [vmem:[%s806_s6] ss:$0 sm:$0xff] }
  0x15   :  { %324 = vmatpush.bf16.msra.mxu3 %v582_v31  ;;  %v397_v11 = vld [vmem:[%s807_s7] sm:$0xff] }
  0x16   :  { %216 = vmatpush.bf16.msra.mxu0 %v561_v21  ;;  %377 = vmatpush.msrb.mxu2 %v354_v48 }
  0x17   :  { %229 = vmatpush.bf16.msra.mxu1 %v569_v22 }
  0x18   :  { %378 = vmatpush.msrb.mxu2 %v353_v49 }
  0x19   :  { %325 = vmatpush.bf16.msra.mxu3 %v581_v32 }
  0x1a   :  { %217 = vmatpush.bf16.msra.mxu0 %v560_v23  ;;  %379 = vmatpush.msrb.mxu2 %v352_v50 }
  0x1b   :  { %230 = vmatpush.bf16.msra.mxu1 %v568_v24 }
  0x1c   :  { %416 = vmatpush.msra.mxu2 %v400_v8 }
  0x1d   :  { %326 = vmatpush.bf16.msra.mxu3 %v580_v33 }
  0x1e   :  { %218 = vmatpush.bf16.msra.mxu0 %v559_v25  ;;  %417 = vmatpush.msra.mxu2 %v399_v9 }
  0x1f   :  { %231 = vmatpush.bf16.msra.mxu1 %v567_v26 }
  0x20   :  { %418 = vmatpush.msra.mxu2 %v398_v10 }
  0x21   :  { %219 = vmatmul.bf16.vlgmr.msra.gmra.mxu0 %v40_v29  ;;  %327 = vmatpush.bf16.msra.mxu3 %v579_v34 }
  0x22   :  { %232 = vmatmul.bf16.vlgmr.msra.gmra.mxu1 %v41_v30  ;;  %419 = vmatpush.msra.mxu2 %v397_v11 }
  0x96   :  { %v246_v35 = vpop.f32.mrf.mxu2 }
  0x9e   :  { %v220_v37 = vpop.f32.mrf.mxu0  ;;  %v248_v40 = vpop.f32.mrf.mxu2 }
  0x9f   :  { %v233_v38 = vpop.f32.mrf.mxu1  ;;  %v221_v39 = vadd.f32 %v591_v36, %v220_v37 }
  0xa1   :  { %v234_v41 = vadd.f32 %v233_v38, %v221_v39 }
  0xa3   :  { %v247_v42 = vadd.f32 %v246_v35, %v234_v41 }
  0xa5   :  { %v250_v43 = vmax.f32 %v247_v42, 0.0 }
  0xa6   :  { %v222_v44 = vpop.f32.mrf.mxu0 }
  0xa7   :  { %v235_v45 = vpop.f32.mrf.mxu1  ;;  %v251_v46 = vpack.c.bf16 %v250_v43, %v250_v43 }
  0xa9   :  { %328 = vmatmul.bf16.vlgmr.msra.gmra.mxu3 %v251_v46 }
 0x12c   :  { %v329_v52 = vpop.f32.mrf.mxu3 }
 0x12d   :  { %v330_v53 = vadd.f32 %v592_v51, %v329_v52 }
 0x12f   :  { %v333_v54 = vsub.f32 0.0, %v330_v53 }
 0x131   :  { %v334_v55 = vmul.f32 1.442695, %v333_v54 }
 0x133   :  { %594 = vpow2.f32 %v334_v55 }
 0x134   :  { %v331_v56 = vpop.f32.mrf.mxu3 }
 0x139   :  { %v595_v57 = vpop.eup %594 }
 0x13a   :  { %v336_v58 = vadd.f32 1.0, %v595_v57 }
 0x13c   :  { %596 = vrcp.f32 %v336_v58  ;;  %v348_v62 = vand.u32 2147483648, %v336_v58  ;;  %v346_v0 = vand.u32 2147483647, %v336_v58  ;;  %vm342_vm2 = vweird.f32 %v336_v58 }
 0x13e   :  { %v349_v2 = vor.u32 1.1754944e-38, %v348_v62  ;;  %vm347_vm5 = vcmp.eq.f32.partialorder %v346_v0, 8.507059e+37 }
 0x142   :  { %v597_v59 = vpop.eup %596 }
 0x143   :  { %v338_v60 = vmul.f32 %v597_v59, %v336_v58  ;;  %vm343_vm1 = vweird.f32 %v597_v59 }
 0x144   :  { %vm344_vm3 = vmor %vm342_vm2, %vm343_vm1 }
 0x145   :  { %v339_v61 = vsub.f32 1.0, %v338_v60 }
 0x147   :  { %v340_v63 = vmul.f32 %v597_v59, %v339_v61 }
 0x149   :  { %v341_v1 = vadd.f32 %v597_v59, %v340_v63 }
 0x14b   :  { %v345_v3 = vsel %vm344_vm3, %v597_v59, %v341_v1 }
 0x14c   :  { %v350_v4 = vsel %vm347_vm5, %v349_v2, %v345_v3 }
 0x14d   :  { %557 = vmatmul.msk.f32.vlgmr.msrb.gmra.mxu2 %vm360_vm4, %v350_v4 }
 0x1d0   :  { %v381_v6 = vpop.f32.mrf.mxu2 }
 0x1d1   :  { %v382_v7 = vadd.f32 %v593_v5, %v381_v6 }
 0x1d3   :  { %393 = vrot.lane.b32.xlu1 %v382_v7, %s626_s26  ;;  %385 = vrot.lane.b32.xlu0 %v382_v7, %s627_s0 }
 0x1db   :  { %389 = vrot.lane.b32.xlu0 %v382_v7, %s628_s27 }
 0x245   :  { %v386_v12 = vpop.permute.xlu0 %385  ;;  %v394_v16 = vpop.permute.xlu1 %393 }
 0x246   :  { %v388_v13 = vmul.f32 %v386_v12, %v382_v7 }
 0x24d   :  { %v390_v14 = vpop.permute.xlu0 %389 }
 0x24e   :  { %v392_v15 = vmul.f32 %v390_v14, %v388_v13 }
 0x250   :  { %v396_v17 = vmul.f32 %v394_v16, %v392_v15 }
 0x252   :  { %558 = vmatmul.msk.f32.vlgmr.msra.gmra.mxu2 %vm360_vm4, %v396_v17 }
 0x2d5   :  { %v421_v18 = vpop.f32.mrf.mxu2 }
 0x2d6   :  { %598 = vlog2.f32 %v421_v18 }
 0x2dc   :  { %v599_v19 = vpop.eup %598 }
 0x2dd   :  { %v425_v20 = vmul.f32 0.6931472, %v599_v19 }
 0x2df   :  { %427 = vst.msk [vmem:[#allocation2] sm:$0x3] %vm426_vm6, %v425_v20 }
 0x2e0   :  { %438 = dma.vmem_to_hbm [thread:$0]  %s434_s13, 32, %s436_s16, [#allocation3]  }
 0x2e1   :  { %624 = dma.done.wait [#allocation3], 32  }
 0x2e2   :  { %625 = vsyncadd [#allocation3], 4294967264 }
 0x2e3   :  { %443 = vsyncpa [#allocation3], 1 }

</bundles_post_ra>
